<compile_context>
chip_gen: v7x
topology: tpu7x:2x2x1
jax: 0.10.0
libtpu: 0.0.40
codegen_flags: <defaults>
</compile_context>

<pallas_src>
import functools

import jax
import jax.numpy as jnp
from jax.experimental import pallas as pl
from jax.experimental.pallas import tpu as pltpu

D_MODEL = 64
NHEAD = 4
HEAD_DIM = D_MODEL // NHEAD
DFF = 128
NUM_LAYERS = 2
LN_EPS = 1e-5


def _layer_norm(x, w, b):
    mean = jnp.mean(x, axis=-1, keepdims=True)
    var = jnp.mean(jnp.square(x - mean), axis=-1, keepdims=True)
    return (x - mean) * jax.lax.rsqrt(var + LN_EPS) * w + b


# ---------------------------------------------------------------------------
# Single fused kernel: embedding + 2 encoder layers + last-token projection.
# ---------------------------------------------------------------------------
def fused_transformer_kernel(batch, seq,
                             x_ref, pos_ref,
                             wqkv_ref, bqkv_ref, wo_ref, bo_ref,
                             ln1w_ref, ln1b_ref, w1_ref, b1_ref,
                             w2_ref, b2_ref, ln2w_ref, ln2b_ref,
                             lin_w_ref, lin_b_ref, out_ref):
    d = D_MODEL
    hd = HEAD_DIM
    bs = batch * seq
    scale = 1.0 / (hd ** 0.5)

    # --- embedding: broadcast add (one VPU pass, O(1) in batch) -------------
    # pos: (S, D) -> (1, S, D); x: (B, S, 1) lane-broadcast -> (B, S, D)
    h3 = pos_ref[...][None, :, :] + x_ref[...]
    h = h3.reshape(bs, d)                                   # (BS, D) f32

    # --- static loop over encoder layers (weights indexed on leading axis) ---
    for l in range(NUM_LAYERS):
        # fused QKV projection: one (BS,D)@(D,3D) MXU matmul, bf16 operands
        qkv = jnp.dot(h.astype(jnp.bfloat16), wqkv_ref[l],
                      preferred_element_type=jnp.float32) + bqkv_ref[l]  # (BS,3D)
        qkv3 = qkv.reshape(batch, seq, 3 * d)               # (B, S, 3D)

        # batched multi-head self-attention: 2 batched einsums + 1 softmax/head
        ctx_heads = []
        for hh in range(NHEAD):
            c = hh * hd
            qh = (qkv3[:, :, c:c + hd] * scale).astype(jnp.bfloat16)      # (B,S,hd)
            kh = qkv3[:, :, d + c:d + c + hd].astype(jnp.bfloat16)        # (B,S,hd)
            vh = qkv3[:, :, 2 * d + c:2 * d + c + hd].astype(jnp.bfloat16)

            s = jnp.einsum('bqd,bkd->bqk', qh, kh,
                           preferred_element_type=jnp.float32)            # (B,S,S)
            s = s - jnp.max(s, axis=-1, keepdims=True)
            p = jnp.exp(s)
            p = p * pl.reciprocal(jnp.sum(p, axis=-1, keepdims=True), approx=True)
            ctx = jnp.einsum('bqk,bkd->bqd', p.astype(jnp.bfloat16), vh,
                             preferred_element_type=jnp.float32)          # (B,S,hd)
            ctx_heads.append(ctx)

        # lane-concat of 4 head contexts (fits one vreg width), then a single
        # (BS, D) @ (D, D) output projection.
        ctx_all = jnp.concatenate(ctx_heads, axis=-1).reshape(bs, d)
        attn = jnp.dot(ctx_all.astype(jnp.bfloat16), wo_ref[l],
                       preferred_element_type=jnp.float32) + bo_ref[l]

        # add & norm 1 (post-norm; dropout is identity at inference) — f32
        y = _layer_norm(h + attn, ln1w_ref[l], ln1b_ref[l])

        # feed-forward (ReLU 64 -> 128 -> 64), bf16 MXU operands, f32 epilogue
        h1 = jnp.maximum(
            jnp.dot(y.astype(jnp.bfloat16), w1_ref[l],
                    preferred_element_type=jnp.float32) + b1_ref[l], 0.0)
        ff = jnp.dot(h1.astype(jnp.bfloat16), w2_ref[l],
                     preferred_element_type=jnp.float32) + b2_ref[l]

        # add & norm 2
        h = _layer_norm(y + ff, ln2w_ref[l], ln2b_ref[l])

    # --- final Linear(d_model -> 1) on the last token of each sequence ------
    # Single static sublane pick (no per-batch concat), then VPU mul + lane sum.
    last = h.reshape(batch, seq, d)[:, seq - 1, :]          # (B, D)
    out = jnp.sum(last * lin_w_ref[...], axis=-1, keepdims=True) + lin_b_ref[...]
    out_ref[...] = out.astype(out_ref.dtype)


def forward(x, params):
    b, s, _ = x.shape
    x = x.astype(jnp.float32)
    pos = params["pos_embed"][:s]                           # (S, D)

    vmem = pl.BlockSpec(memory_space=pltpu.MemorySpace.VMEM)
    kernel = functools.partial(fused_transformer_kernel, b, s)

    # Gridless: total resident footprint (<1 MiB) fits VMEM on v5e/v6e/v7x.
    # On v7x, a batch-'parallel' grid would use the 2nd TensorCore once B is
    # large enough to amortize the ~0.35us/step overhead.
    return pl.pallas_call(
        kernel,
        out_shape=jax.ShapeDtypeStruct((b, 1), jnp.float32),
        in_specs=[vmem] * 16,
        out_specs=vmem,
    )(x, pos,
      params["wqkv"], params["bqkv"], params["wo"], params["bo"],
      params["ln1w"], params["ln1b"], params["w1"], params["b1"],
      params["w2"], params["b2"], params["ln2w"], params["ln2b"],
      params["lin_w"], params["lin_b"])


# ---------------------------------------------------------------------------
# Parameter init (deterministic, synthetic).  Per-layer weights stacked on a
# leading layer axis; MXU weight matrices stored in bf16 (MXU-native on all
# of v5e/v6e/v7x); biases / LayerNorm / pos-embed / output head stay f32.
# ---------------------------------------------------------------------------
def init_params(key):
    keys = iter(jax.random.split(key, 32))

    def nrm(shape, scale=0.05, dtype=jnp.float32):
        return (scale * jax.random.normal(next(keys), shape)).astype(dtype)

    L = NUM_LAYERS
    return {
        "pos_embed": nrm((200, D_MODEL), 0.1),
        "wqkv": nrm((L, D_MODEL, 3 * D_MODEL), dtype=jnp.bfloat16),
        "bqkv": nrm((L, 1, 3 * D_MODEL)),
        "wo": nrm((L, D_MODEL, D_MODEL), dtype=jnp.bfloat16),
        "bo": nrm((L, 1, D_MODEL)),
        "ln1w": jnp.ones((L, 1, D_MODEL), jnp.float32),
        "ln1b": jnp.zeros((L, 1, D_MODEL), jnp.float32),
        "w1": nrm((L, D_MODEL, DFF), dtype=jnp.bfloat16),
        "b1": nrm((L, 1, DFF)),
        "w2": nrm((L, DFF, D_MODEL), dtype=jnp.bfloat16),
        "b2": nrm((L, 1, D_MODEL)),
        "ln2w": jnp.ones((L, 1, D_MODEL), jnp.float32),
        "ln2b": jnp.zeros((L, 1, D_MODEL), jnp.float32),
        "lin_w": nrm((1, D_MODEL)),
        "lin_b": jnp.zeros((1, 1), jnp.float32),
    }


# ---------------------------------------------------------------------------
# Pure-JAX reference (f32 math; bf16 weights are upcast by promotion, so the
# only kernel-vs-reference delta is the bf16 cast of matmul activations and
# the approx softmax reciprocal — covered by the 2e-2 tolerance below).
# ---------------------------------------------------------------------------
def reference_forward(x, params):
    b, s, _ = x.shape
    src = params["pos_embed"][:s][None] + jnp.repeat(x, D_MODEL, axis=-1)
    hd = HEAD_DIM
    for l in range(NUM_LAYERS):
        qkv = src @ params["wqkv"][l].astype(jnp.float32) + params["bqkv"][l, 0]
        q, k, v = jnp.split(qkv, 3, axis=-1)
        q = q.reshape(b, s, NHEAD, hd).transpose(0, 2, 1, 3)
        k = k.reshape(b, s, NHEAD, hd).transpose(0, 2, 1, 3)
        v = v.reshape(b, s, NHEAD, hd).transpose(0, 2, 1, 3)
        scores = (q @ jnp.swapaxes(k, -1, -2)) / jnp.sqrt(jnp.float32(hd))
        att = jax.nn.softmax(scores, axis=-1)
        ctx = (att @ v).transpose(0, 2, 1, 3).reshape(b, s, D_MODEL)
        attn = ctx @ params["wo"][l].astype(jnp.float32) + params["bo"][l, 0]
        y = _layer_norm(src + attn, params["ln1w"][l, 0], params["ln1b"][l, 0])
        ff = (jnp.maximum(y @ params["w1"][l].astype(jnp.float32)
                          + params["b1"][l, 0], 0.0)
              @ params["w2"][l].astype(jnp.float32) + params["b2"][l, 0])
        src = _layer_norm(y + ff, params["ln2w"][l, 0], params["ln2b"][l, 0])
    return src[:, -1, :] @ params["lin_w"].T + params["lin_b"]


if __name__ == "__main__":
    key = jax.random.PRNGKey(0)
    kp, kx = jax.random.split(key)
    params = init_params(kp)

    B, S = 2, 8
    x = jax.random.normal(kx, (B, S, 1), dtype=jnp.float32)

    out = jax.block_until_ready(forward(x, params))
    ref = reference_forward(x, params)

    assert out.shape == (B, 1), out.shape
    assert bool(jnp.all(jnp.isfinite(out)))
    # Tolerance accounts for bf16 matmul activations + approx softmax recip.
    assert bool(jnp.allclose(out, ref, atol=2e-2, rtol=2e-2)), (out, ref)
    print("KERNEL_OK")
</pallas_src>

<mosaic_0001>
module attributes {stable_mosaic.version = 11 : i64} {
  func.func @fused_transformer_kernel(%arg0: memref<2x8x1xf32, #tpu.memory_space<vmem>>, %arg1: memref<8x64xf32, #tpu.memory_space<vmem>>, %arg2: memref<2x64x192xbf16, #tpu.memory_space<vmem>>, %arg3: memref<2x1x192xf32, #tpu.memory_space<vmem>>, %arg4: memref<2x64x64xbf16, #tpu.memory_space<vmem>>, %arg5: memref<2x1x64xf32, #tpu.memory_space<vmem>>, %arg6: memref<2x1x64xf32, #tpu.memory_space<vmem>>, %arg7: memref<2x1x64xf32, #tpu.memory_space<vmem>>, %arg8: memref<2x64x128xbf16, #tpu.memory_space<vmem>>, %arg9: memref<2x1x128xf32, #tpu.memory_space<vmem>>, %arg10: memref<2x128x64xbf16, #tpu.memory_space<vmem>>, %arg11: memref<2x1x64xf32, #tpu.memory_space<vmem>>, %arg12: memref<2x1x64xf32, #tpu.memory_space<vmem>>, %arg13: memref<2x1x64xf32, #tpu.memory_space<vmem>>, %arg14: memref<1x64xf32, #tpu.memory_space<vmem>>, %arg15: memref<1x1xf32, #tpu.memory_space<vmem>>, %arg16: memref<2x1xf32, #tpu.memory_space<vmem>>) attributes {dimension_semantics = [], scalar_prefetch = 0 : i64, scratch_operands = 0 : i64, tpu.core_type = #tpu.core_type<tc>} {
    %c0 = arith.constant 0 : index
    %c0_0 = arith.constant 0 : index
    %0 = vector.load %arg1[%c0, %c0_0] : memref<8x64xf32, #tpu.memory_space<vmem>>, vector<8x64xf32>
    %1 = vector.shape_cast %0 : vector<8x64xf32> to vector<1x8x64xf32>
    %c0_1 = arith.constant 0 : index
    %c0_2 = arith.constant 0 : index
    %c0_3 = arith.constant 0 : index
    %2 = vector.load %arg0[%c0_1, %c0_2, %c0_3] : memref<2x8x1xf32, #tpu.memory_space<vmem>>, vector<2x8x1xf32>
    %3 = vector.broadcast %1 : vector<1x8x64xf32> to vector<2x8x64xf32>
    %4 = vector.broadcast %2 : vector<2x8x1xf32> to vector<2x8x64xf32>
    %5 = arith.addf %3, %4 : vector<2x8x64xf32>
    %6 = vector.shape_cast %5 : vector<2x8x64xf32> to vector<16x64xf32>
    %7 = arith.truncf %6 : vector<16x64xf32> to vector<16x64xbf16>
    %c0_4 = arith.constant 0 : index
    %c0_5 = arith.constant 0 : index
    %c0_6 = arith.constant 0 : index
    %8 = vector.load %arg2[%c0_4, %c0_5, %c0_6] : memref<2x64x192xbf16, #tpu.memory_space<vmem>>, vector<1x64x192xbf16>
    %9 = vector.shape_cast %8 : vector<1x64x192xbf16> to vector<64x192xbf16>
    %cst = arith.constant dense<0.000000e+00> : vector<16x192xf32>
    %10 = tpu.matmul %7, %9, %cst {dimension_numbers = #tpu.dot_dimension_numbers<[1], [0], [0], [1], [0, 0, 1, 1], [], []>} : vector<16x64xbf16>, vector<64x192xbf16>, vector<16x192xf32> -> vector<16x192xf32>
    %c0_7 = arith.constant 0 : index
    %c0_8 = arith.constant 0 : index
    %c0_9 = arith.constant 0 : index
    %11 = vector.load %arg3[%c0_7, %c0_8, %c0_9] : memref<2x1x192xf32, #tpu.memory_space<vmem>>, vector<1x1x192xf32>
    %12 = vector.shape_cast %11 : vector<1x1x192xf32> to vector<1x192xf32>
    %13 = vector.broadcast %12 : vector<1x192xf32> to vector<16x192xf32>
    %14 = arith.addf %10, %13 : vector<16x192xf32>
    %15 = vector.shape_cast %14 : vector<16x192xf32> to vector<2x8x192xf32>
    %16 = vector.extract_strided_slice %15 {offsets = [0, 0, 0], sizes = [2, 8, 16], strides = [1, 1, 1]} : vector<2x8x192xf32> to vector<2x8x16xf32>
    %cst_10 = arith.constant 2.500000e-01 : f32
    %17 = vector.broadcast %cst_10 : f32 to vector<2x8x16xf32>
    %18 = arith.mulf %16, %17 : vector<2x8x16xf32>
    %19 = arith.truncf %18 : vector<2x8x16xf32> to vector<2x8x16xbf16>
    %20 = vector.extract_strided_slice %15 {offsets = [0, 0, 64], sizes = [2, 8, 16], strides = [1, 1, 1]} : vector<2x8x192xf32> to vector<2x8x16xf32>
    %21 = arith.truncf %20 : vector<2x8x16xf32> to vector<2x8x16xbf16>
    %22 = vector.extract_strided_slice %15 {offsets = [0, 0, 128], sizes = [2, 8, 16], strides = [1, 1, 1]} : vector<2x8x192xf32> to vector<2x8x16xf32>
    %23 = arith.truncf %22 : vector<2x8x16xf32> to vector<2x8x16xbf16>
    "tpu.trace_start"() <{level = 10 : i32, message = "bqd,bkd->bqk"}> : () -> ()
    %cst_11 = arith.constant dense<0.000000e+00> : vector<2x8x8xf32>
    %24 = tpu.matmul %19, %21, %cst_11 {dimension_numbers = #tpu.dot_dimension_numbers<[2], [2], [1], [1], [0, 0, 0, 1, 1, 1], [0], [0]>} : vector<2x8x16xbf16>, vector<2x8x16xbf16>, vector<2x8x8xf32> -> vector<2x8x8xf32>
    "tpu.trace_stop"() : () -> ()
    %cst_12 = arith.constant dense<0xFF800000> : vector<2x8xf32>
    %25 = vector.multi_reduction <maximumf>, %24, %cst_12 [2] : vector<2x8x8xf32> to vector<2x8xf32>
    %26 = vector.shape_cast %25 : vector<2x8xf32> to vector<2x8x1xf32>
    %27 = vector.broadcast %26 : vector<2x8x1xf32> to vector<2x8x8xf32>
    %28 = arith.subf %24, %27 : vector<2x8x8xf32>
    %29 = math.exp %28 : vector<2x8x8xf32>
    %cst_13 = arith.constant dense<0.000000e+00> : vector<2x8xf32>
    %30 = vector.multi_reduction <add>, %29, %cst_13 [2] : vector<2x8x8xf32> to vector<2x8xf32>
    %31 = vector.shape_cast %30 : vector<2x8xf32> to vector<2x8x1xf32>
    %32 = tpu.reciprocal %31 {approx = true} : vector<2x8x1xf32> -> vector<2x8x1xf32>
    %33 = vector.broadcast %32 : vector<2x8x1xf32> to vector<2x8x8xf32>
    %34 = arith.mulf %29, %33 : vector<2x8x8xf32>
    %35 = arith.truncf %34 : vector<2x8x8xf32> to vector<2x8x8xbf16>
    "tpu.trace_start"() <{level = 10 : i32, message = "bqk,bkd->bqd"}> : () -> ()
    %cst_14 = arith.constant dense<0.000000e+00> : vector<2x8x16xf32>
    %36 = tpu.matmul %35, %23, %cst_14 {dimension_numbers = #tpu.dot_dimension_numbers<[2], [1], [1], [2], [0, 0, 0, 1, 1, 2], [0], [0]>} : vector<2x8x8xbf16>, vector<2x8x16xbf16>, vector<2x8x16xf32> -> vector<2x8x16xf32>
    "tpu.trace_stop"() : () -> ()
    %37 = vector.extract_strided_slice %15 {offsets = [0, 0, 16], sizes = [2, 8, 16], strides = [1, 1, 1]} : vector<2x8x192xf32> to vector<2x8x16xf32>
    %cst_15 = arith.constant 2.500000e-01 : f32
    %38 = vector.broadcast %cst_15 : f32 to vector<2x8x16xf32>
    %39 = arith.mulf %37, %38 : vector<2x8x16xf32>
    %40 = arith.truncf %39 : vector<2x8x16xf32> to vector<2x8x16xbf16>
    %41 = vector.extract_strided_slice %15 {offsets = [0, 0, 80], sizes = [2, 8, 16], strides = [1, 1, 1]} : vector<2x8x192xf32> to vector<2x8x16xf32>
    %42 = arith.truncf %41 : vector<2x8x16xf32> to vector<2x8x16xbf16>
    %43 = vector.extract_strided_slice %15 {offsets = [0, 0, 144], sizes = [2, 8, 16], strides = [1, 1, 1]} : vector<2x8x192xf32> to vector<2x8x16xf32>
    %44 = arith.truncf %43 : vector<2x8x16xf32> to vector<2x8x16xbf16>
    "tpu.trace_start"() <{level = 10 : i32, message = "bqd,bkd->bqk"}> : () -> ()
    %cst_16 = arith.constant dense<0.000000e+00> : vector<2x8x8xf32>
    %45 = tpu.matmul %40, %42, %cst_16 {dimension_numbers = #tpu.dot_dimension_numbers<[2], [2], [1], [1], [0, 0, 0, 1, 1, 1], [0], [0]>} : vector<2x8x16xbf16>, vector<2x8x16xbf16>, vector<2x8x8xf32> -> vector<2x8x8xf32>
    "tpu.trace_stop"() : () -> ()
    %cst_17 = arith.constant dense<0xFF800000> : vector<2x8xf32>
    %46 = vector.multi_reduction <maximumf>, %45, %cst_17 [2] : vector<2x8x8xf32> to vector<2x8xf32>
    %47 = vector.shape_cast %46 : vector<2x8xf32> to vector<2x8x1xf32>
    %48 = vector.broadcast %47 : vector<2x8x1xf32> to vector<2x8x8xf32>
    %49 = arith.subf %45, %48 : vector<2x8x8xf32>
    %50 = math.exp %49 : vector<2x8x8xf32>
    %cst_18 = arith.constant dense<0.000000e+00> : vector<2x8xf32>
    %51 = vector.multi_reduction <add>, %50, %cst_18 [2] : vector<2x8x8xf32> to vector<2x8xf32>
    %52 = vector.shape_cast %51 : vector<2x8xf32> to vector<2x8x1xf32>
    %53 = tpu.reciprocal %52 {approx = true} : vector<2x8x1xf32> -> vector<2x8x1xf32>
    %54 = vector.broadcast %53 : vector<2x8x1xf32> to vector<2x8x8xf32>
    %55 = arith.mulf %50, %54 : vector<2x8x8xf32>
    %56 = arith.truncf %55 : vector<2x8x8xf32> to vector<2x8x8xbf16>
    "tpu.trace_start"() <{level = 10 : i32, message = "bqk,bkd->bqd"}> : () -> ()
    %cst_19 = arith.constant dense<0.000000e+00> : vector<2x8x16xf32>
    %57 = tpu.matmul %56, %44, %cst_19 {dimension_numbers = #tpu.dot_dimension_numbers<[2], [1], [1], [2], [0, 0, 0, 1, 1, 2], [0], [0]>} : vector<2x8x8xbf16>, vector<2x8x16xbf16>, vector<2x8x16xf32> -> vector<2x8x16xf32>
    "tpu.trace_stop"() : () -> ()
    %58 = vector.extract_strided_slice %15 {offsets = [0, 0, 32], sizes = [2, 8, 16], strides = [1, 1, 1]} : vector<2x8x192xf32> to vector<2x8x16xf32>
    %cst_20 = arith.constant 2.500000e-01 : f32
    %59 = vector.broadcast %cst_20 : f32 to vector<2x8x16xf32>
    %60 = arith.mulf %58, %59 : vector<2x8x16xf32>
    %61 = arith.truncf %60 : vector<2x8x16xf32> to vector<2x8x16xbf16>
    %62 = vector.extract_strided_slice %15 {offsets = [0, 0, 96], sizes = [2, 8, 16], strides = [1, 1, 1]} : vector<2x8x192xf32> to vector<2x8x16xf32>
    %63 = arith.truncf %62 : vector<2x8x16xf32> to vector<2x8x16xbf16>
    %64 = vector.extract_strided_slice %15 {offsets = [0, 0, 160], sizes = [2, 8, 16], strides = [1, 1, 1]} : vector<2x8x192xf32> to vector<2x8x16xf32>
    %65 = arith.truncf %64 : vector<2x8x16xf32> to vector<2x8x16xbf16>
    "tpu.trace_start"() <{level = 10 : i32, message = "bqd,bkd->bqk"}> : () -> ()
    %cst_21 = arith.constant dense<0.000000e+00> : vector<2x8x8xf32>
    %66 = tpu.matmul %61, %63, %cst_21 {dimension_numbers = #tpu.dot_dimension_numbers<[2], [2], [1], [1], [0, 0, 0, 1, 1, 1], [0], [0]>} : vector<2x8x16xbf16>, vector<2x8x16xbf16>, vector<2x8x8xf32> -> vector<2x8x8xf32>
    "tpu.trace_stop"() : () -> ()
    %cst_22 = arith.constant dense<0xFF800000> : vector<2x8xf32>
    %67 = vector.multi_reduction <maximumf>, %66, %cst_22 [2] : vector<2x8x8xf32> to vector<2x8xf32>
    %68 = vector.shape_cast %67 : vector<2x8xf32> to vector<2x8x1xf32>
    %69 = vector.broadcast %68 : vector<2x8x1xf32> to vector<2x8x8xf32>
    %70 = arith.subf %66, %69 : vector<2x8x8xf32>
    %71 = math.exp %70 : vector<2x8x8xf32>
    %cst_23 = arith.constant dense<0.000000e+00> : vector<2x8xf32>
    %72 = vector.multi_reduction <add>, %71, %cst_23 [2] : vector<2x8x8xf32> to vector<2x8xf32>
    %73 = vector.shape_cast %72 : vector<2x8xf32> to vector<2x8x1xf32>
    %74 = tpu.reciprocal %73 {approx = true} : vector<2x8x1xf32> -> vector<2x8x1xf32>
    %75 = vector.broadcast %74 : vector<2x8x1xf32> to vector<2x8x8xf32>
    %76 = arith.mulf %71, %75 : vector<2x8x8xf32>
    %77 = arith.truncf %76 : vector<2x8x8xf32> to vector<2x8x8xbf16>
    "tpu.trace_start"() <{level = 10 : i32, message = "bqk,bkd->bqd"}> : () -> ()
    %cst_24 = arith.constant dense<0.000000e+00> : vector<2x8x16xf32>
    %78 = tpu.matmul %77, %65, %cst_24 {dimension_numbers = #tpu.dot_dimension_numbers<[2], [1], [1], [2], [0, 0, 0, 1, 1, 2], [0], [0]>} : vector<2x8x8xbf16>, vector<2x8x16xbf16>, vector<2x8x16xf32> -> vector<2x8x16xf32>
    "tpu.trace_stop"() : () -> ()
    %79 = vector.extract_strided_slice %15 {offsets = [0, 0, 48], sizes = [2, 8, 16], strides = [1, 1, 1]} : vector<2x8x192xf32> to vector<2x8x16xf32>
    %cst_25 = arith.constant 2.500000e-01 : f32
    %80 = vector.broadcast %cst_25 : f32 to vector<2x8x16xf32>
    %81 = arith.mulf %79, %80 : vector<2x8x16xf32>
    %82 = arith.truncf %81 : vector<2x8x16xf32> to vector<2x8x16xbf16>
    %83 = vector.extract_strided_slice %15 {offsets = [0, 0, 112], sizes = [2, 8, 16], strides = [1, 1, 1]} : vector<2x8x192xf32> to vector<2x8x16xf32>
    %84 = arith.truncf %83 : vector<2x8x16xf32> to vector<2x8x16xbf16>
    %85 = vector.extract_strided_slice %15 {offsets = [0, 0, 176], sizes = [2, 8, 16], strides = [1, 1, 1]} : vector<2x8x192xf32> to vector<2x8x16xf32>
    %86 = arith.truncf %85 : vector<2x8x16xf32> to vector<2x8x16xbf16>
    "tpu.trace_start"() <{level = 10 : i32, message = "bqd,bkd->bqk"}> : () -> ()
    %cst_26 = arith.constant dense<0.000000e+00> : vector<2x8x8xf32>
    %87 = tpu.matmul %82, %84, %cst_26 {dimension_numbers = #tpu.dot_dimension_numbers<[2], [2], [1], [1], [0, 0, 0, 1, 1, 1], [0], [0]>} : vector<2x8x16xbf16>, vector<2x8x16xbf16>, vector<2x8x8xf32> -> vector<2x8x8xf32>
    "tpu.trace_stop"() : () -> ()
    %cst_27 = arith.constant dense<0xFF800000> : vector<2x8xf32>
    %88 = vector.multi_reduction <maximumf>, %87, %cst_27 [2] : vector<2x8x8xf32> to vector<2x8xf32>
    %89 = vector.shape_cast %88 : vector<2x8xf32> to vector<2x8x1xf32>
    %90 = vector.broadcast %89 : vector<2x8x1xf32> to vector<2x8x8xf32>
    %91 = arith.subf %87, %90 : vector<2x8x8xf32>
    %92 = math.exp %91 : vector<2x8x8xf32>
    %cst_28 = arith.constant dense<0.000000e+00> : vector<2x8xf32>
    %93 = vector.multi_reduction <add>, %92, %cst_28 [2] : vector<2x8x8xf32> to vector<2x8xf32>
    %94 = vector.shape_cast %93 : vector<2x8xf32> to vector<2x8x1xf32>
    %95 = tpu.reciprocal %94 {approx = true} : vector<2x8x1xf32> -> vector<2x8x1xf32>
    %96 = vector.broadcast %95 : vector<2x8x1xf32> to vector<2x8x8xf32>
    %97 = arith.mulf %92, %96 : vector<2x8x8xf32>
    %98 = arith.truncf %97 : vector<2x8x8xf32> to vector<2x8x8xbf16>
    "tpu.trace_start"() <{level = 10 : i32, message = "bqk,bkd->bqd"}> : () -> ()
    %cst_29 = arith.constant dense<0.000000e+00> : vector<2x8x16xf32>
    %99 = tpu.matmul %98, %86, %cst_29 {dimension_numbers = #tpu.dot_dimension_numbers<[2], [1], [1], [2], [0, 0, 0, 1, 1, 2], [0], [0]>} : vector<2x8x8xbf16>, vector<2x8x16xbf16>, vector<2x8x16xf32> -> vector<2x8x16xf32>
    "tpu.trace_stop"() : () -> ()
    %100 = tpu.concatenate %36, %57, %78, %99 in 2 : vector<2x8x16xf32>, vector<2x8x16xf32>, vector<2x8x16xf32>, vector<2x8x16xf32> -> vector<2x8x64xf32>
    %101 = vector.shape_cast %100 : vector<2x8x64xf32> to vector<16x64xf32>
    %102 = arith.truncf %101 : vector<16x64xf32> to vector<16x64xbf16>
    %c0_30 = arith.constant 0 : index
    %c0_31 = arith.constant 0 : index
    %c0_32 = arith.constant 0 : index
    %103 = vector.load %arg4[%c0_30, %c0_31, %c0_32] : memref<2x64x64xbf16, #tpu.memory_space<vmem>>, vector<1x64x64xbf16>
    %104 = vector.shape_cast %103 : vector<1x64x64xbf16> to vector<64x64xbf16>
    %cst_33 = arith.constant dense<0.000000e+00> : vector<16x64xf32>
    %105 = tpu.matmul %102, %104, %cst_33 {dimension_numbers = #tpu.dot_dimension_numbers<[1], [0], [0], [1], [0, 0, 1, 1], [], []>} : vector<16x64xbf16>, vector<64x64xbf16>, vector<16x64xf32> -> vector<16x64xf32>
    %c0_34 = arith.constant 0 : index
    %c0_35 = arith.constant 0 : index
    %c0_36 = arith.constant 0 : index
    %106 = vector.load %arg5[%c0_34, %c0_35, %c0_36] : memref<2x1x64xf32, #tpu.memory_space<vmem>>, vector<1x1x64xf32>
    %107 = vector.shape_cast %106 : vector<1x1x64xf32> to vector<1x64xf32>
    %108 = vector.broadcast %107 : vector<1x64xf32> to vector<16x64xf32>
    %109 = arith.addf %105, %108 : vector<16x64xf32>
    %110 = arith.addf %6, %109 : vector<16x64xf32>
    %c0_37 = arith.constant 0 : index
    %c0_38 = arith.constant 0 : index
    %c0_39 = arith.constant 0 : index
    %111 = vector.load %arg6[%c0_37, %c0_38, %c0_39] : memref<2x1x64xf32, #tpu.memory_space<vmem>>, vector<1x1x64xf32>
    %112 = vector.shape_cast %111 : vector<1x1x64xf32> to vector<1x64xf32>
    %c0_40 = arith.constant 0 : index
    %c0_41 = arith.constant 0 : index
    %c0_42 = arith.constant 0 : index
    %113 = vector.load %arg7[%c0_40, %c0_41, %c0_42] : memref<2x1x64xf32, #tpu.memory_space<vmem>>, vector<1x1x64xf32>
    %114 = vector.shape_cast %113 : vector<1x1x64xf32> to vector<1x64xf32>
    %cst_43 = arith.constant dense<0.000000e+00> : vector<16xf32>
    %115 = vector.multi_reduction <add>, %110, %cst_43 [1] : vector<16x64xf32> to vector<16xf32>
    %116 = vector.shape_cast %115 : vector<16xf32> to vector<16x1xf32>
    %cst_44 = arith.constant 6.400000e+01 : f32
    %117 = vector.broadcast %cst_44 : f32 to vector<16x1xf32>
    %118 = arith.divf %116, %117 : vector<16x1xf32>
    %119 = vector.broadcast %118 : vector<16x1xf32> to vector<16x64xf32>
    %120 = arith.subf %110, %119 : vector<16x64xf32>
    %121 = arith.mulf %120, %120 : vector<16x64xf32>
    %cst_45 = arith.constant dense<0.000000e+00> : vector<16xf32>
    %122 = vector.multi_reduction <add>, %121, %cst_45 [1] : vector<16x64xf32> to vector<16xf32>
    %123 = vector.shape_cast %122 : vector<16xf32> to vector<16x1xf32>
    %cst_46 = arith.constant 6.400000e+01 : f32
    %124 = vector.broadcast %cst_46 : f32 to vector<16x1xf32>
    %125 = arith.divf %123, %124 : vector<16x1xf32>
    %126 = vector.broadcast %118 : vector<16x1xf32> to vector<16x64xf32>
    %127 = arith.subf %110, %126 : vector<16x64xf32>
    %cst_47 = arith.constant 9.99999974E-6 : f32
    %128 = vector.broadcast %cst_47 : f32 to vector<16x1xf32>
    %129 = arith.addf %125, %128 : vector<16x1xf32>
    %130 = math.rsqrt %129 : vector<16x1xf32>
    %131 = vector.broadcast %130 : vector<16x1xf32> to vector<16x64xf32>
    %132 = arith.mulf %127, %131 : vector<16x64xf32>
    %133 = vector.broadcast %112 : vector<1x64xf32> to vector<16x64xf32>
    %134 = arith.mulf %132, %133 : vector<16x64xf32>
    %135 = vector.broadcast %114 : vector<1x64xf32> to vector<16x64xf32>
    %136 = arith.addf %134, %135 : vector<16x64xf32>
    %137 = arith.truncf %136 : vector<16x64xf32> to vector<16x64xbf16>
    %c0_48 = arith.constant 0 : index
    %c0_49 = arith.constant 0 : index
    %c0_50 = arith.constant 0 : index
    %138 = vector.load %arg8[%c0_48, %c0_49, %c0_50] : memref<2x64x128xbf16, #tpu.memory_space<vmem>>, vector<1x64x128xbf16>
    %139 = vector.shape_cast %138 : vector<1x64x128xbf16> to vector<64x128xbf16>
    %cst_51 = arith.constant dense<0.000000e+00> : vector<16x128xf32>
    %140 = tpu.matmul %137, %139, %cst_51 {dimension_numbers = #tpu.dot_dimension_numbers<[1], [0], [0], [1], [0, 0, 1, 1], [], []>} : vector<16x64xbf16>, vector<64x128xbf16>, vector<16x128xf32> -> vector<16x128xf32>
    %c0_52 = arith.constant 0 : index
    %c0_53 = arith.constant 0 : index
    %c0_54 = arith.constant 0 : index
    %141 = vector.load %arg9[%c0_52, %c0_53, %c0_54] : memref<2x1x128xf32, #tpu.memory_space<vmem>>, vector<1x1x128xf32>
    %142 = vector.shape_cast %141 : vector<1x1x128xf32> to vector<1x128xf32>
    %143 = vector.broadcast %142 : vector<1x128xf32> to vector<16x128xf32>
    %144 = arith.addf %140, %143 : vector<16x128xf32>
    %cst_55 = arith.constant 0.000000e+00 : f32
    %145 = vector.broadcast %cst_55 : f32 to vector<16x128xf32>
    %146 = arith.maximumf %144, %145 : vector<16x128xf32>
    %147 = arith.truncf %146 : vector<16x128xf32> to vector<16x128xbf16>
    %c0_56 = arith.constant 0 : index
    %c0_57 = arith.constant 0 : index
    %c0_58 = arith.constant 0 : index
    %148 = vector.load %arg10[%c0_56, %c0_57, %c0_58] : memref<2x128x64xbf16, #tpu.memory_space<vmem>>, vector<1x128x64xbf16>
    %149 = vector.shape_cast %148 : vector<1x128x64xbf16> to vector<128x64xbf16>
    %cst_59 = arith.constant dense<0.000000e+00> : vector<16x64xf32>
    %150 = tpu.matmul %147, %149, %cst_59 {dimension_numbers = #tpu.dot_dimension_numbers<[1], [0], [0], [1], [0, 0, 1, 1], [], []>} : vector<16x128xbf16>, vector<128x64xbf16>, vector<16x64xf32> -> vector<16x64xf32>
    %c0_60 = arith.constant 0 : index
    %c0_61 = arith.constant 0 : index
    %c0_62 = arith.constant 0 : index
    %151 = vector.load %arg11[%c0_60, %c0_61, %c0_62] : memref<2x1x64xf32, #tpu.memory_space<vmem>>, vector<1x1x64xf32>
    %152 = vector.shape_cast %151 : vector<1x1x64xf32> to vector<1x64xf32>
    %153 = vector.broadcast %152 : vector<1x64xf32> to vector<16x64xf32>
    %154 = arith.addf %150, %153 : vector<16x64xf32>
    %155 = arith.addf %136, %154 : vector<16x64xf32>
    %c0_63 = arith.constant 0 : index
    %c0_64 = arith.constant 0 : index
    %c0_65 = arith.constant 0 : index
    %156 = vector.load %arg12[%c0_63, %c0_64, %c0_65] : memref<2x1x64xf32, #tpu.memory_space<vmem>>, vector<1x1x64xf32>
    %157 = vector.shape_cast %156 : vector<1x1x64xf32> to vector<1x64xf32>
    %c0_66 = arith.constant 0 : index
    %c0_67 = arith.constant 0 : index
    %c0_68 = arith.constant 0 : index
    %158 = vector.load %arg13[%c0_66, %c0_67, %c0_68] : memref<2x1x64xf32, #tpu.memory_space<vmem>>, vector<1x1x64xf32>
    %159 = vector.shape_cast %158 : vector<1x1x64xf32> to vector<1x64xf32>
    %cst_69 = arith.constant dense<0.000000e+00> : vector<16xf32>
    %160 = vector.multi_reduction <add>, %155, %cst_69 [1] : vector<16x64xf32> to vector<16xf32>
    %161 = vector.shape_cast %160 : vector<16xf32> to vector<16x1xf32>
    %cst_70 = arith.constant 6.400000e+01 : f32
    %162 = vector.broadcast %cst_70 : f32 to vector<16x1xf32>
    %163 = arith.divf %161, %162 : vector<16x1xf32>
    %164 = vector.broadcast %163 : vector<16x1xf32> to vector<16x64xf32>
    %165 = arith.subf %155, %164 : vector<16x64xf32>
    %166 = arith.mulf %165, %165 : vector<16x64xf32>
    %cst_71 = arith.constant dense<0.000000e+00> : vector<16xf32>
    %167 = vector.multi_reduction <add>, %166, %cst_71 [1] : vector<16x64xf32> to vector<16xf32>
    %168 = vector.shape_cast %167 : vector<16xf32> to vector<16x1xf32>
    %cst_72 = arith.constant 6.400000e+01 : f32
    %169 = vector.broadcast %cst_72 : f32 to vector<16x1xf32>
    %170 = arith.divf %168, %169 : vector<16x1xf32>
    %171 = vector.broadcast %163 : vector<16x1xf32> to vector<16x64xf32>
    %172 = arith.subf %155, %171 : vector<16x64xf32>
    %cst_73 = arith.constant 9.99999974E-6 : f32
    %173 = vector.broadcast %cst_73 : f32 to vector<16x1xf32>
    %174 = arith.addf %170, %173 : vector<16x1xf32>
    %175 = math.rsqrt %174 : vector<16x1xf32>
    %176 = vector.broadcast %175 : vector<16x1xf32> to vector<16x64xf32>
    %177 = arith.mulf %172, %176 : vector<16x64xf32>
    %178 = vector.broadcast %157 : vector<1x64xf32> to vector<16x64xf32>
    %179 = arith.mulf %177, %178 : vector<16x64xf32>
    %180 = vector.broadcast %159 : vector<1x64xf32> to vector<16x64xf32>
    %181 = arith.addf %179, %180 : vector<16x64xf32>
    %182 = arith.truncf %181 : vector<16x64xf32> to vector<16x64xbf16>
    %c1 = arith.constant 1 : index
    %c0_74 = arith.constant 0 : index
    %c0_75 = arith.constant 0 : index
    %183 = vector.load %arg2[%c1, %c0_74, %c0_75] : memref<2x64x192xbf16, #tpu.memory_space<vmem>>, vector<1x64x192xbf16>
    %184 = vector.shape_cast %183 : vector<1x64x192xbf16> to vector<64x192xbf16>
    %cst_76 = arith.constant dense<0.000000e+00> : vector<16x192xf32>
    %185 = tpu.matmul %182, %184, %cst_76 {dimension_numbers = #tpu.dot_dimension_numbers<[1], [0], [0], [1], [0, 0, 1, 1], [], []>} : vector<16x64xbf16>, vector<64x192xbf16>, vector<16x192xf32> -> vector<16x192xf32>
    %c1_77 = arith.constant 1 : index
    %c0_78 = arith.constant 0 : index
    %c0_79 = arith.constant 0 : index
    %186 = vector.load %arg3[%c1_77, %c0_78, %c0_79] : memref<2x1x192xf32, #tpu.memory_space<vmem>>, vector<1x1x192xf32>
    %187 = vector.shape_cast %186 : vector<1x1x192xf32> to vector<1x192xf32>
    %188 = vector.broadcast %187 : vector<1x192xf32> to vector<16x192xf32>
    %189 = arith.addf %185, %188 : vector<16x192xf32>
    %190 = vector.shape_cast %189 : vector<16x192xf32> to vector<2x8x192xf32>
    %191 = vector.extract_strided_slice %190 {offsets = [0, 0, 0], sizes = [2, 8, 16], strides = [1, 1, 1]} : vector<2x8x192xf32> to vector<2x8x16xf32>
    %cst_80 = arith.constant 2.500000e-01 : f32
    %192 = vector.broadcast %cst_80 : f32 to vector<2x8x16xf32>
    %193 = arith.mulf %191, %192 : vector<2x8x16xf32>
    %194 = arith.truncf %193 : vector<2x8x16xf32> to vector<2x8x16xbf16>
    %195 = vector.extract_strided_slice %190 {offsets = [0, 0, 64], sizes = [2, 8, 16], strides = [1, 1, 1]} : vector<2x8x192xf32> to vector<2x8x16xf32>
    %196 = arith.truncf %195 : vector<2x8x16xf32> to vector<2x8x16xbf16>
    %197 = vector.extract_strided_slice %190 {offsets = [0, 0, 128], sizes = [2, 8, 16], strides = [1, 1, 1]} : vector<2x8x192xf32> to vector<2x8x16xf32>
    %198 = arith.truncf %197 : vector<2x8x16xf32> to vector<2x8x16xbf16>
    "tpu.trace_start"() <{level = 10 : i32, message = "bqd,bkd->bqk"}> : () -> ()
    %cst_81 = arith.constant dense<0.000000e+00> : vector<2x8x8xf32>
    %199 = tpu.matmul %194, %196, %cst_81 {dimension_numbers = #tpu.dot_dimension_numbers<[2], [2], [1], [1], [0, 0, 0, 1, 1, 1], [0], [0]>} : vector<2x8x16xbf16>, vector<2x8x16xbf16>, vector<2x8x8xf32> -> vector<2x8x8xf32>
    "tpu.trace_stop"() : () -> ()
    %cst_82 = arith.constant dense<0xFF800000> : vector<2x8xf32>
    %200 = vector.multi_reduction <maximumf>, %199, %cst_82 [2] : vector<2x8x8xf32> to vector<2x8xf32>
    %201 = vector.shape_cast %200 : vector<2x8xf32> to vector<2x8x1xf32>
    %202 = vector.broadcast %201 : vector<2x8x1xf32> to vector<2x8x8xf32>
    %203 = arith.subf %199, %202 : vector<2x8x8xf32>
    %204 = math.exp %203 : vector<2x8x8xf32>
    %cst_83 = arith.constant dense<0.000000e+00> : vector<2x8xf32>
    %205 = vector.multi_reduction <add>, %204, %cst_83 [2] : vector<2x8x8xf32> to vector<2x8xf32>
    %206 = vector.shape_cast %205 : vector<2x8xf32> to vector<2x8x1xf32>
    %207 = tpu.reciprocal %206 {approx = true} : vector<2x8x1xf32> -> vector<2x8x1xf32>
    %208 = vector.broadcast %207 : vector<2x8x1xf32> to vector<2x8x8xf32>
    %209 = arith.mulf %204, %208 : vector<2x8x8xf32>
    %210 = arith.truncf %209 : vector<2x8x8xf32> to vector<2x8x8xbf16>
    "tpu.trace_start"() <{level = 10 : i32, message = "bqk,bkd->bqd"}> : () -> ()
    %cst_84 = arith.constant dense<0.000000e+00> : vector<2x8x16xf32>
    %211 = tpu.matmul %210, %198, %cst_84 {dimension_numbers = #tpu.dot_dimension_numbers<[2], [1], [1], [2], [0, 0, 0, 1, 1, 2], [0], [0]>} : vector<2x8x8xbf16>, vector<2x8x16xbf16>, vector<2x8x16xf32> -> vector<2x8x16xf32>
    "tpu.trace_stop"() : () -> ()
    %212 = vector.extract_strided_slice %190 {offsets = [0, 0, 16], sizes = [2, 8, 16], strides = [1, 1, 1]} : vector<2x8x192xf32> to vector<2x8x16xf32>
    %cst_85 = arith.constant 2.500000e-01 : f32
    %213 = vector.broadcast %cst_85 : f32 to vector<2x8x16xf32>
    %214 = arith.mulf %212, %213 : vector<2x8x16xf32>
    %215 = arith.truncf %214 : vector<2x8x16xf32> to vector<2x8x16xbf16>
    %216 = vector.extract_strided_slice %190 {offsets = [0, 0, 80], sizes = [2, 8, 16], strides = [1, 1, 1]} : vector<2x8x192xf32> to vector<2x8x16xf32>
    %217 = arith.truncf %216 : vector<2x8x16xf32> to vector<2x8x16xbf16>
    %218 = vector.extract_strided_slice %190 {offsets = [0, 0, 144], sizes = [2, 8, 16], strides = [1, 1, 1]} : vector<2x8x192xf32> to vector<2x8x16xf32>
    %219 = arith.truncf %218 : vector<2x8x16xf32> to vector<2x8x16xbf16>
    "tpu.trace_start"() <{level = 10 : i32, message = "bqd,bkd->bqk"}> : () -> ()
    %cst_86 = arith.constant dense<0.000000e+00> : vector<2x8x8xf32>
    %220 = tpu.matmul %215, %217, %cst_86 {dimension_numbers = #tpu.dot_dimension_numbers<[2], [2], [1], [1], [0, 0, 0, 1, 1, 1], [0], [0]>} : vector<2x8x16xbf16>, vector<2x8x16xbf16>, vector<2x8x8xf32> -> vector<2x8x8xf32>
    "tpu.trace_stop"() : () -> ()
    %cst_87 = arith.constant dense<0xFF800000> : vector<2x8xf32>
    %221 = vector.multi_reduction <maximumf>, %220, %cst_87 [2] : vector<2x8x8xf32> to vector<2x8xf32>
    %222 = vector.shape_cast %221 : vector<2x8xf32> to vector<2x8x1xf32>
    %223 = vector.broadcast %222 : vector<2x8x1xf32> to vector<2x8x8xf32>
    %224 = arith.subf %220, %223 : vector<2x8x8xf32>
    %225 = math.exp %224 : vector<2x8x8xf32>
    %cst_88 = arith.constant dense<0.000000e+00> : vector<2x8xf32>
    %226 = vector.multi_reduction <add>, %225, %cst_88 [2] : vector<2x8x8xf32> to vector<2x8xf32>
    %227 = vector.shape_cast %226 : vector<2x8xf32> to vector<2x8x1xf32>
    %228 = tpu.reciprocal %227 {approx = true} : vector<2x8x1xf32> -> vector<2x8x1xf32>
    %229 = vector.broadcast %228 : vector<2x8x1xf32> to vector<2x8x8xf32>
    %230 = arith.mulf %225, %229 : vector<2x8x8xf32>
    %231 = arith.truncf %230 : vector<2x8x8xf32> to vector<2x8x8xbf16>
    "tpu.trace_start"() <{level = 10 : i32, message = "bqk,bkd->bqd"}> : () -> ()
    %cst_89 = arith.constant dense<0.000000e+00> : vector<2x8x16xf32>
    %232 = tpu.matmul %231, %219, %cst_89 {dimension_numbers = #tpu.dot_dimension_numbers<[2], [1], [1], [2], [0, 0, 0, 1, 1, 2], [0], [0]>} : vector<2x8x8xbf16>, vector<2x8x16xbf16>, vector<2x8x16xf32> -> vector<2x8x16xf32>
    "tpu.trace_stop"() : () -> ()
    %233 = vector.extract_strided_slice %190 {offsets = [0, 0, 32], sizes = [2, 8, 16], strides = [1, 1, 1]} : vector<2x8x192xf32> to vector<2x8x16xf32>
    %cst_90 = arith.constant 2.500000e-01 : f32
    %234 = vector.broadcast %cst_90 : f32 to vector<2x8x16xf32>
    %235 = arith.mulf %233, %234 : vector<2x8x16xf32>
    %236 = arith.truncf %235 : vector<2x8x16xf32> to vector<2x8x16xbf16>
    %237 = vector.extract_strided_slice %190 {offsets = [0, 0, 96], sizes = [2, 8, 16], strides = [1, 1, 1]} : vector<2x8x192xf32> to vector<2x8x16xf32>
    %238 = arith.truncf %237 : vector<2x8x16xf32> to vector<2x8x16xbf16>
    %239 = vector.extract_strided_slice %190 {offsets = [0, 0, 160], sizes = [2, 8, 16], strides = [1, 1, 1]} : vector<2x8x192xf32> to vector<2x8x16xf32>
    %240 = arith.truncf %239 : vector<2x8x16xf32> to vector<2x8x16xbf16>
    "tpu.trace_start"() <{level = 10 : i32, message = "bqd,bkd->bqk"}> : () -> ()
    %cst_91 = arith.constant dense<0.000000e+00> : vector<2x8x8xf32>
    %241 = tpu.matmul %236, %238, %cst_91 {dimension_numbers = #tpu.dot_dimension_numbers<[2], [2], [1], [1], [0, 0, 0, 1, 1, 1], [0], [0]>} : vector<2x8x16xbf16>, vector<2x8x16xbf16>, vector<2x8x8xf32> -> vector<2x8x8xf32>
    "tpu.trace_stop"() : () -> ()
    %cst_92 = arith.constant dense<0xFF800000> : vector<2x8xf32>
    %242 = vector.multi_reduction <maximumf>, %241, %cst_92 [2] : vector<2x8x8xf32> to vector<2x8xf32>
    %243 = vector.shape_cast %242 : vector<2x8xf32> to vector<2x8x1xf32>
    %244 = vector.broadcast %243 : vector<2x8x1xf32> to vector<2x8x8xf32>
    %245 = arith.subf %241, %244 : vector<2x8x8xf32>
    %246 = math.exp %245 : vector<2x8x8xf32>
    %cst_93 = arith.constant dense<0.000000e+00> : vector<2x8xf32>
    %247 = vector.multi_reduction <add>, %246, %cst_93 [2] : vector<2x8x8xf32> to vector<2x8xf32>
    %248 = vector.shape_cast %247 : vector<2x8xf32> to vector<2x8x1xf32>
    %249 = tpu.reciprocal %248 {approx = true} : vector<2x8x1xf32> -> vector<2x8x1xf32>
    %250 = vector.broadcast %249 : vector<2x8x1xf32> to vector<2x8x8xf32>
    %251 = arith.mulf %246, %250 : vector<2x8x8xf32>
    %252 = arith.truncf %251 : vector<2x8x8xf32> to vector<2x8x8xbf16>
    "tpu.trace_start"() <{level = 10 : i32, message = "bqk,bkd->bqd"}> : () -> ()
    %cst_94 = arith.constant dense<0.000000e+00> : vector<2x8x16xf32>
    %253 = tpu.matmul %252, %240, %cst_94 {dimension_numbers = #tpu.dot_dimension_numbers<[2], [1], [1], [2], [0, 0, 0, 1, 1, 2], [0], [0]>} : vector<2x8x8xbf16>, vector<2x8x16xbf16>, vector<2x8x16xf32> -> vector<2x8x16xf32>
    "tpu.trace_stop"() : () -> ()
    %254 = vector.extract_strided_slice %190 {offsets = [0, 0, 48], sizes = [2, 8, 16], strides = [1, 1, 1]} : vector<2x8x192xf32> to vector<2x8x16xf32>
    %cst_95 = arith.constant 2.500000e-01 : f32
    %255 = vector.broadcast %cst_95 : f32 to vector<2x8x16xf32>
    %256 = arith.mulf %254, %255 : vector<2x8x16xf32>
    %257 = arith.truncf %256 : vector<2x8x16xf32> to vector<2x8x16xbf16>
    %258 = vector.extract_strided_slice %190 {offsets = [0, 0, 112], sizes = [2, 8, 16], strides = [1, 1, 1]} : vector<2x8x192xf32> to vector<2x8x16xf32>
    %259 = arith.truncf %258 : vector<2x8x16xf32> to vector<2x8x16xbf16>
    %260 = vector.extract_strided_slice %190 {offsets = [0, 0, 176], sizes = [2, 8, 16], strides = [1, 1, 1]} : vector<2x8x192xf32> to vector<2x8x16xf32>
    %261 = arith.truncf %260 : vector<2x8x16xf32> to vector<2x8x16xbf16>
    "tpu.trace_start"() <{level = 10 : i32, message = "bqd,bkd->bqk"}> : () -> ()
    %cst_96 = arith.constant dense<0.000000e+00> : vector<2x8x8xf32>
    %262 = tpu.matmul %257, %259, %cst_96 {dimension_numbers = #tpu.dot_dimension_numbers<[2], [2], [1], [1], [0, 0, 0, 1, 1, 1], [0], [0]>} : vector<2x8x16xbf16>, vector<2x8x16xbf16>, vector<2x8x8xf32> -> vector<2x8x8xf32>
    "tpu.trace_stop"() : () -> ()
    %cst_97 = arith.constant dense<0xFF800000> : vector<2x8xf32>
    %263 = vector.multi_reduction <maximumf>, %262, %cst_97 [2] : vector<2x8x8xf32> to vector<2x8xf32>
    %264 = vector.shape_cast %263 : vector<2x8xf32> to vector<2x8x1xf32>
    %265 = vector.broadcast %264 : vector<2x8x1xf32> to vector<2x8x8xf32>
    %266 = arith.subf %262, %265 : vector<2x8x8xf32>
    %267 = math.exp %266 : vector<2x8x8xf32>
    %cst_98 = arith.constant dense<0.000000e+00> : vector<2x8xf32>
    %268 = vector.multi_reduction <add>, %267, %cst_98 [2] : vector<2x8x8xf32> to vector<2x8xf32>
    %269 = vector.shape_cast %268 : vector<2x8xf32> to vector<2x8x1xf32>
    %270 = tpu.reciprocal %269 {approx = true} : vector<2x8x1xf32> -> vector<2x8x1xf32>
    %271 = vector.broadcast %270 : vector<2x8x1xf32> to vector<2x8x8xf32>
    %272 = arith.mulf %267, %271 : vector<2x8x8xf32>
    %273 = arith.truncf %272 : vector<2x8x8xf32> to vector<2x8x8xbf16>
    "tpu.trace_start"() <{level = 10 : i32, message = "bqk,bkd->bqd"}> : () -> ()
    %cst_99 = arith.constant dense<0.000000e+00> : vector<2x8x16xf32>
    %274 = tpu.matmul %273, %261, %cst_99 {dimension_numbers = #tpu.dot_dimension_numbers<[2], [1], [1], [2], [0, 0, 0, 1, 1, 2], [0], [0]>} : vector<2x8x8xbf16>, vector<2x8x16xbf16>, vector<2x8x16xf32> -> vector<2x8x16xf32>
    "tpu.trace_stop"() : () -> ()
    %275 = tpu.concatenate %211, %232, %253, %274 in 2 : vector<2x8x16xf32>, vector<2x8x16xf32>, vector<2x8x16xf32>, vector<2x8x16xf32> -> vector<2x8x64xf32>
    %276 = vector.shape_cast %275 : vector<2x8x64xf32> to vector<16x64xf32>
    %277 = arith.truncf %276 : vector<16x64xf32> to vector<16x64xbf16>
    %c1_100 = arith.constant 1 : index
    %c0_101 = arith.constant 0 : index
    %c0_102 = arith.constant 0 : index
    %278 = vector.load %arg4[%c1_100, %c0_101, %c0_102] : memref<2x64x64xbf16, #tpu.memory_space<vmem>>, vector<1x64x64xbf16>
    %279 = vector.shape_cast %278 : vector<1x64x64xbf16> to vector<64x64xbf16>
    %cst_103 = arith.constant dense<0.000000e+00> : vector<16x64xf32>
    %280 = tpu.matmul %277, %279, %cst_103 {dimension_numbers = #tpu.dot_dimension_numbers<[1], [0], [0], [1], [0, 0, 1, 1], [], []>} : vector<16x64xbf16>, vector<64x64xbf16>, vector<16x64xf32> -> vector<16x64xf32>
    %c1_104 = arith.constant 1 : index
    %c0_105 = arith.constant 0 : index
    %c0_106 = arith.constant 0 : index
    %281 = vector.load %arg5[%c1_104, %c0_105, %c0_106] : memref<2x1x64xf32, #tpu.memory_space<vmem>>, vector<1x1x64xf32>
    %282 = vector.shape_cast %281 : vector<1x1x64xf32> to vector<1x64xf32>
    %283 = vector.broadcast %282 : vector<1x64xf32> to vector<16x64xf32>
    %284 = arith.addf %280, %283 : vector<16x64xf32>
    %285 = arith.addf %181, %284 : vector<16x64xf32>
    %c1_107 = arith.constant 1 : index
    %c0_108 = arith.constant 0 : index
    %c0_109 = arith.constant 0 : index
    %286 = vector.load %arg6[%c1_107, %c0_108, %c0_109] : memref<2x1x64xf32, #tpu.memory_space<vmem>>, vector<1x1x64xf32>
    %287 = vector.shape_cast %286 : vector<1x1x64xf32> to vector<1x64xf32>
    %c1_110 = arith.constant 1 : index
    %c0_111 = arith.constant 0 : index
    %c0_112 = arith.constant 0 : index
    %288 = vector.load %arg7[%c1_110, %c0_111, %c0_112] : memref<2x1x64xf32, #tpu.memory_space<vmem>>, vector<1x1x64xf32>
    %289 = vector.shape_cast %288 : vector<1x1x64xf32> to vector<1x64xf32>
    %cst_113 = arith.constant dense<0.000000e+00> : vector<16xf32>
    %290 = vector.multi_reduction <add>, %285, %cst_113 [1] : vector<16x64xf32> to vector<16xf32>
    %291 = vector.shape_cast %290 : vector<16xf32> to vector<16x1xf32>
    %cst_114 = arith.constant 6.400000e+01 : f32
    %292 = vector.broadcast %cst_114 : f32 to vector<16x1xf32>
    %293 = arith.divf %291, %292 : vector<16x1xf32>
    %294 = vector.broadcast %293 : vector<16x1xf32> to vector<16x64xf32>
    %295 = arith.subf %285, %294 : vector<16x64xf32>
    %296 = arith.mulf %295, %295 : vector<16x64xf32>
    %cst_115 = arith.constant dense<0.000000e+00> : vector<16xf32>
    %297 = vector.multi_reduction <add>, %296, %cst_115 [1] : vector<16x64xf32> to vector<16xf32>
    %298 = vector.shape_cast %297 : vector<16xf32> to vector<16x1xf32>
    %cst_116 = arith.constant 6.400000e+01 : f32
    %299 = vector.broadcast %cst_116 : f32 to vector<16x1xf32>
    %300 = arith.divf %298, %299 : vector<16x1xf32>
    %301 = vector.broadcast %293 : vector<16x1xf32> to vector<16x64xf32>
    %302 = arith.subf %285, %301 : vector<16x64xf32>
    %cst_117 = arith.constant 9.99999974E-6 : f32
    %303 = vector.broadcast %cst_117 : f32 to vector<16x1xf32>
    %304 = arith.addf %300, %303 : vector<16x1xf32>
    %305 = math.rsqrt %304 : vector<16x1xf32>
    %306 = vector.broadcast %305 : vector<16x1xf32> to vector<16x64xf32>
    %307 = arith.mulf %302, %306 : vector<16x64xf32>
    %308 = vector.broadcast %287 : vector<1x64xf32> to vector<16x64xf32>
    %309 = arith.mulf %307, %308 : vector<16x64xf32>
    %310 = vector.broadcast %289 : vector<1x64xf32> to vector<16x64xf32>
    %311 = arith.addf %309, %310 : vector<16x64xf32>
    %312 = arith.truncf %311 : vector<16x64xf32> to vector<16x64xbf16>
    %c1_118 = arith.constant 1 : index
    %c0_119 = arith.constant 0 : index
    %c0_120 = arith.constant 0 : index
    %313 = vector.load %arg8[%c1_118, %c0_119, %c0_120] : memref<2x64x128xbf16, #tpu.memory_space<vmem>>, vector<1x64x128xbf16>
    %314 = vector.shape_cast %313 : vector<1x64x128xbf16> to vector<64x128xbf16>
    %cst_121 = arith.constant dense<0.000000e+00> : vector<16x128xf32>
    %315 = tpu.matmul %312, %314, %cst_121 {dimension_numbers = #tpu.dot_dimension_numbers<[1], [0], [0], [1], [0, 0, 1, 1], [], []>} : vector<16x64xbf16>, vector<64x128xbf16>, vector<16x128xf32> -> vector<16x128xf32>
    %c1_122 = arith.constant 1 : index
    %c0_123 = arith.constant 0 : index
    %c0_124 = arith.constant 0 : index
    %316 = vector.load %arg9[%c1_122, %c0_123, %c0_124] : memref<2x1x128xf32, #tpu.memory_space<vmem>>, vector<1x1x128xf32>
    %317 = vector.shape_cast %316 : vector<1x1x128xf32> to vector<1x128xf32>
    %318 = vector.broadcast %317 : vector<1x128xf32> to vector<16x128xf32>
    %319 = arith.addf %315, %318 : vector<16x128xf32>
    %cst_125 = arith.constant 0.000000e+00 : f32
    %320 = vector.broadcast %cst_125 : f32 to vector<16x128xf32>
    %321 = arith.maximumf %319, %320 : vector<16x128xf32>
    %322 = arith.truncf %321 : vector<16x128xf32> to vector<16x128xbf16>
    %c1_126 = arith.constant 1 : index
    %c0_127 = arith.constant 0 : index
    %c0_128 = arith.constant 0 : index
    %323 = vector.load %arg10[%c1_126, %c0_127, %c0_128] : memref<2x128x64xbf16, #tpu.memory_space<vmem>>, vector<1x128x64xbf16>
    %324 = vector.shape_cast %323 : vector<1x128x64xbf16> to vector<128x64xbf16>
    %cst_129 = arith.constant dense<0.000000e+00> : vector<16x64xf32>
    %325 = tpu.matmul %322, %324, %cst_129 {dimension_numbers = #tpu.dot_dimension_numbers<[1], [0], [0], [1], [0, 0, 1, 1], [], []>} : vector<16x128xbf16>, vector<128x64xbf16>, vector<16x64xf32> -> vector<16x64xf32>
    %c1_130 = arith.constant 1 : index
    %c0_131 = arith.constant 0 : index
    %c0_132 = arith.constant 0 : index
    %326 = vector.load %arg11[%c1_130, %c0_131, %c0_132] : memref<2x1x64xf32, #tpu.memory_space<vmem>>, vector<1x1x64xf32>
    %327 = vector.shape_cast %326 : vector<1x1x64xf32> to vector<1x64xf32>
    %328 = vector.broadcast %327 : vector<1x64xf32> to vector<16x64xf32>
    %329 = arith.addf %325, %328 : vector<16x64xf32>
    %330 = arith.addf %311, %329 : vector<16x64xf32>
    %c1_133 = arith.constant 1 : index
    %c0_134 = arith.constant 0 : index
    %c0_135 = arith.constant 0 : index
    %331 = vector.load %arg12[%c1_133, %c0_134, %c0_135] : memref<2x1x64xf32, #tpu.memory_space<vmem>>, vector<1x1x64xf32>
    %332 = vector.shape_cast %331 : vector<1x1x64xf32> to vector<1x64xf32>
    %c1_136 = arith.constant 1 : index
    %c0_137 = arith.constant 0 : index
    %c0_138 = arith.constant 0 : index
    %333 = vector.load %arg13[%c1_136, %c0_137, %c0_138] : memref<2x1x64xf32, #tpu.memory_space<vmem>>, vector<1x1x64xf32>
    %334 = vector.shape_cast %333 : vector<1x1x64xf32> to vector<1x64xf32>
    %cst_139 = arith.constant dense<0.000000e+00> : vector<16xf32>
    %335 = vector.multi_reduction <add>, %330, %cst_139 [1] : vector<16x64xf32> to vector<16xf32>
    %336 = vector.shape_cast %335 : vector<16xf32> to vector<16x1xf32>
    %cst_140 = arith.constant 6.400000e+01 : f32
    %337 = vector.broadcast %cst_140 : f32 to vector<16x1xf32>
    %338 = arith.divf %336, %337 : vector<16x1xf32>
    %339 = vector.broadcast %338 : vector<16x1xf32> to vector<16x64xf32>
    %340 = arith.subf %330, %339 : vector<16x64xf32>
    %341 = arith.mulf %340, %340 : vector<16x64xf32>
    %cst_141 = arith.constant dense<0.000000e+00> : vector<16xf32>
    %342 = vector.multi_reduction <add>, %341, %cst_141 [1] : vector<16x64xf32> to vector<16xf32>
    %343 = vector.shape_cast %342 : vector<16xf32> to vector<16x1xf32>
    %cst_142 = arith.constant 6.400000e+01 : f32
    %344 = vector.broadcast %cst_142 : f32 to vector<16x1xf32>
    %345 = arith.divf %343, %344 : vector<16x1xf32>
    %346 = vector.broadcast %338 : vector<16x1xf32> to vector<16x64xf32>
    %347 = arith.subf %330, %346 : vector<16x64xf32>
    %cst_143 = arith.constant 9.99999974E-6 : f32
    %348 = vector.broadcast %cst_143 : f32 to vector<16x1xf32>
    %349 = arith.addf %345, %348 : vector<16x1xf32>
    %350 = math.rsqrt %349 : vector<16x1xf32>
    %351 = vector.broadcast %350 : vector<16x1xf32> to vector<16x64xf32>
    %352 = arith.mulf %347, %351 : vector<16x64xf32>
    %353 = vector.broadcast %332 : vector<1x64xf32> to vector<16x64xf32>
    %354 = arith.mulf %352, %353 : vector<16x64xf32>
    %355 = vector.broadcast %334 : vector<1x64xf32> to vector<16x64xf32>
    %356 = arith.addf %354, %355 : vector<16x64xf32>
    %357 = vector.shape_cast %356 : vector<16x64xf32> to vector<2x8x64xf32>
    %358 = vector.extract_strided_slice %357 {offsets = [0, 7, 0], sizes = [2, 1, 64], strides = [1, 1, 1]} : vector<2x8x64xf32> to vector<2x1x64xf32>
    %359 = vector.shape_cast %358 : vector<2x1x64xf32> to vector<2x64xf32>
    %c0_144 = arith.constant 0 : index
    %c0_145 = arith.constant 0 : index
    %360 = vector.load %arg14[%c0_144, %c0_145] : memref<1x64xf32, #tpu.memory_space<vmem>>, vector<1x64xf32>
    %361 = vector.broadcast %360 : vector<1x64xf32> to vector<2x64xf32>
    %362 = arith.mulf %359, %361 : vector<2x64xf32>
    %cst_146 = arith.constant dense<0.000000e+00> : vector<2xf32>
    %363 = vector.multi_reduction <add>, %362, %cst_146 [1] : vector<2x64xf32> to vector<2xf32>
    %364 = vector.shape_cast %363 : vector<2xf32> to vector<2x1xf32>
    %c0_147 = arith.constant 0 : index
    %c0_148 = arith.constant 0 : index
    %365 = vector.load %arg15[%c0_147, %c0_148] : memref<1x1xf32, #tpu.memory_space<vmem>>, vector<1x1xf32>
    %366 = vector.broadcast %365 : vector<1x1xf32> to vector<2x1xf32>
    %367 = arith.addf %364, %366 : vector<2x1xf32>
    %c0_149 = arith.constant 0 : index
    %c0_150 = arith.constant 0 : index
    %368 = vector.load %arg16[%c0_149, %c0_150] : memref<2x1xf32, #tpu.memory_space<vmem>>, vector<2x1xf32>
    tpu.vector_store %arg16[%c0_149, %c0_150], %367 {strides = array<i32>} : memref<2x1xf32, #tpu.memory_space<vmem>>, vector<2x1xf32>,
    return
  }
}

</mosaic_0001>

<bundles_post_ra>
// kernel: tpu_custom_call.1
= control target key start
LH: loop header
LB: loop body
LE: loop exit
PB: predicated region body
PF: predicated region fallthrough
CT: control target
= control target key end

     0   :  { %s4416_s0 = inlined_call_operand.vmem [shape: f32[2,8,1], index: 0, kind: input, shape index: {}]   ;;  %s4417_s1 = inlined_call_operand.vmem [shape: f32[8,64], index: 1, kind: input, shape index: {}]   ;;  %s4418_s2 = inlined_call_operand.vmem [shape: bf16[2,64,192], index: 2, kind: input, shape index: {}]   ;;  %s4419_s3 = inlined_call_operand.vmem [shape: f32[2,1,192], index: 3, kind: input, shape index: {}]   ;;  %s4420_s4 = inlined_call_operand.vmem [shape: bf16[2,64,64], index: 4, kind: input, shape index: {}]   ;;  %s4421_s5 = inlined_call_operand.vmem [shape: f32[2,1,64], index: 5, kind: input, shape index: {}]   ;;  %s4422_s6 = inlined_call_operand.vmem [shape: f32[2,1,64], index: 6, kind: input, shape index: {}]   ;;  %s4423_s7 = inlined_call_operand.vmem [shape: f32[2,1,64], index: 7, kind: input, shape index: {}]   ;;  %s4424_s8 = inlined_call_operand.hbm [shape: bf16[2,64,128], index: 8, kind: input, shape index: {}]   ;;  %s4425_s9 = inlined_call_operand.vmem [shape: f32[2,1,128], index: 9, kind: input, shape index: {}]   ;;  %s4426_s10 = inlined_call_operand.vmem [shape: bf16[2,128,64], index: 10, kind: input, shape index: {}]   ;;  %s4427_s11 = inlined_call_operand.vmem [shape: f32[2,1,64], index: 11, kind: input, shape index: {}]   ;;  %s4428_s12 = inlined_call_operand.vmem [shape: f32[2,1,64], index: 12, kind: input, shape index: {}]   ;;  %s4429_s13 = inlined_call_operand.vmem [shape: f32[2,1,64], index: 13, kind: input, shape index: {}]   ;;  %s4430_s14 = inlined_call_operand.vmem [shape: f32[1,64], index: 14, kind: input, shape index: {}]   ;;  %s4431_s15 = inlined_call_operand.<no memory space> [shape: f32[1,1], index: 15, kind: input, shape index: {}]   ;;  %s4432_s16 = inlined_call_operand.vmem [shape: f32[2,1], index: 16, kind: output, shape index: {}]  }
   0x1   :  { %4434 = sst [smem:[#allocation6_spill]] %s4416_s0  ;;  %v21_v0 = vstv %s4431_s15 }
   0x2   :  { %22 = vst [vmem:[#allocation2] sm:$0x1] %v21_v0 }
   0x3   :  { %23 = vsyncpa [#allocation4], 0  ;;  %s3667_s23 = smov [#allocation3]   ;;  %s3643_s27 = scalar_lea.hbm %s4424_s8, 1024 }
   0x4   :  { %s45_s24 = sshll.u32 %s3667_s23, 4  ;;  %p3644_p0 = scmp.ne.s32.totalorder %s4424_s8, %s3643_s27  ;;  %s46_s24 = int_to_ptr.vmem [resolvable:$true] %s45_s24 }
   0x5   :  { %p3647_p1 = scmp.lt.u32.totalorder %s3643_s27, %s4424_s8 }
   0x7   :  { %p3649_p2 = pnand %p3647_p1, %p3644_p0 }
   0x9   :  { %3652 = shalt.err (!%p3649_p2)
}
   0xa   :  { %s3653_s15 = scalar_lea.vmem %s46_s24, 1024  ;;  %p3658_p4 = scmp.lt.s32.totalorder %s46_s24, %s46_s24 }
   0xb   :  { %p3654_p3 = scmp.ne.s32.totalorder %s46_s24, %s3653_s15  ;;  %p3659_p5 = scmp.lt.s32.totalorder %s3653_s15, %s3653_s15 }
   0xd   :  { %p3660_p6 = por %p3659_p5, %p3658_p4 }
   0xf   :  { %p3661_p7 = pnand %p3660_p6, %p3654_p3 }
  0x11   :  { %3664 = shalt.err (!%p3661_p7)
}
  0x12   :  { %s3668_s17 = smov 64   ;;  %s3669_s18 = smov 4  }
  0x13   :  { %51 = dma.hbm_to_vmem [thread:$0]  %s4424_s8, 1024, %s46_s24, [#allocation4], %s3668_s17, %s3668_s17, %s3669_s18  }
  0x14   :  { %3665 = dma.done.wait [#allocation4], 1024  }
  0x15   :  { %3666 = vsyncadd [#allocation4], 4294966272  ;;  %v3670_v1 = vmov 0   ;;  %s4435_s23 = sld [smem:[#allocation6_spill]]  ;;  %v3507_v4 = vld [vmem:[%s4418_s2 + $0x4] ss:$8 sps:$4 sm:$0xff]   ;;  %v96_v19 = vlaneseq }
  0x16   :  { %3476 = vset.pattern.permute.xlu0 %v3670_v1  ;;  %182 = vmatprep.mubr.bf16.mxu1 %v3670_v1  ;;  %v3509_v5 = vld [vmem:[%s4418_s2] ss:$8 sps:$4 sm:$0xff]   ;;  %v3510_v6 = vld [vmem:[%s4418_s2 + $0x14] ss:$8 sps:$4 sm:$0xff]   ;;  %v3512_v7 = vld [vmem:[%s4418_s2 + $0x10] ss:$8 sps:$4 sm:$0xff]  }
  0x17   :  { %150 = vmatprep.subr.bf16.mxu1 %v3507_v4  ;;  %v3513_v8 = vld [vmem:[%s4418_s2 + $0x24] ss:$8 sps:$4 sm:$0xff]   ;;  %v3515_v9 = vld [vmem:[%s4418_s2 + $0x20] ss:$8 sps:$4 sm:$0xff]   ;;  %v3516_v10 = vld [vmem:[%s4418_s2 + $0x34] ss:$8 sps:$4 sm:$0xff]  }
  0x18   :  { %151 = vmatpush1.bf16.msra.mxu1 %v3509_v5  ;;  %v3518_v11 = vld [vmem:[%s4418_s2 + $0x30] ss:$8 sps:$4 sm:$0xff]   ;;  %v70_v13 = vld [vmem:[%s4417_s1] sm:$0xff]  ;;  %vm146_vm0 = vcmask 523264   ;;  %v3671_v18 = vmov 0.0   ;;  %v3825_v20 = vshrl.u32 %v96_v19, 7 }
  0x19   :  { %152 = vmatprep.subr.bf16.mxu1 %v3510_v6  ;;  %3196 = vmatprep.subr.bf16.mxu0 %v3671_v18  ;;  %v94_v22 = vld [vmem:[%s4419_s3] sm:$0x3]  ;;  %vm3672_vm1 = vmmov 0   ;;  %vm328_vm2 = vcmask 1043456   ;;  %vm204_vm3 = vcmask 130048   ;;  %vm300_vm4 = vcmask 64512  }
  0x1a   :  { %v98_v21 = vsub.s32 0, %v3825_v20  ;;  %v102_v23 = vsub.s32 1, %v3825_v20  ;;  %3198 = vmatprep.mubr.msk.bf16.mxu0 %vm3672_vm1, %v3671_v18  ;;  %s3673_s24 = smov 48   ;;  %s3674_s29 = smov 112   ;;  %vm1108_vm5 = vcmask 261120   ;;  %vm1111_vm6 = vcmask 392192  }
  0x1b   :  { %v71_v2 = vld [vmem:[%s4435_s23] sm:$0xff]  ;;  %v72_v3 = vld [vmem:[%s4435_s23 + $0x8] sm:$0xff]  ;;  %s3675_s30 = smov 32   ;;  %s3676_s0 = smov 96   ;;  %vm2914_vm7 = vcmask 523271   ;;  %vm2918_vm8 = vcmask 516096  }
  0x1c   :  { %75 = vperm.xlu0 %3476, %v71_v2   ;;  %153 = vmatpush1.bf16.msra.mxu1 %v3512_v7  ;;  %v99_v24 = vrot.slane %v94_v22, %v98_v21  ;;  %v103_v25 = vrot.slane %v94_v22, %v102_v23  ;;  %s3677_s15 = smov 16   ;;  %s3678_s18 = smov 80   ;;  %vm2931_vm9 = vcmask 7175   ;;  %vm2933_vm10 = vcmask 0  }
  0x1d   :  { %154 = vmatprep.subr.bf16.mxu1 %v3513_v8 }
  0x20   :  { %80 = vperm.xlu0 %3476, %v72_v3   ;;  %155 = vmatpush1.bf16.msra.mxu1 %v3515_v9 }
  0x21   :  { %156 = vmatprep.subr.bf16.mxu1 %v3516_v10 }
  0x24   :  { %157 = vmatpush1.bf16.msra.mxu1 %v3518_v11 }
  0x25   :  { %3184 = vmatprep.subr.bf16.mxu1 %v3671_v18 }
  0x9b   :  { %v76_v12 = vpop.permute.xlu0 %75 }
  0x9c   :  { %v3816_v15 = vadd.f32 %v76_v12, %v70_v13 }
  0x9f   :  { %v81_v14 = vpop.permute.xlu0 %80 }
  0xa0   :  { %v3818_v16 = vadd.f32 %v81_v14, %v70_v13 }
  0xa2   :  { %v85_v17 = vpack.c.bf16 %v3818_v16, %v3816_v15 }
  0xa4   :  { %2948 = vmatmul.mubr.msk.bf16.vlgmr.msra.gmra.mrb[0].mxu1 %vm146_vm0, %v85_v17 }
  0xa5   :  { %3186 = vmatprep.mubr.msk.bf16.mxu1 %vm3672_vm1, %v3671_v18 }
 0x177   :  { %v184_v26 = vpop.f32.mrb[0].mxu1 }
 0x178   :  { %v185_v27 = vadd.f32 %v184_v26, %v99_v24  ;;  %v186_v28 = vpop.f32.mrb[1].mxu1 }
 0x179   :  { %v187_v29 = vadd.f32 %v186_v28, %v103_v25  ;;  %v188_v30 = vpop.f32.mrb[2].mxu1 }
 0x17a   :  { %v3840_v31 = vpack.c.bf16 %v185_v27, %v185_v27  ;;  %v189_v32 = vadd.f32 %v188_v30, %v99_v24  ;;  %v190_v33 = vpop.f32.mrb[3].mxu1  ;;  %v193_v40 = vmul.f32 0.25, %v185_v27 }
 0x17b   :  { %v3842_v34 = vpack.c.bf16 %v187_v29, %v187_v29  ;;  %v191_v35 = vadd.f32 %v190_v33, %v103_v25 }
 0x17c   :  { %202 = vrot.lane.b32.xlu1 %v3840_v31, %s3668_s17  ;;  %v3848_v37 = vpack.c.bf16 %v189_v32, %v189_v32  ;;  %v3855_v42 = vpack.c.bf16 %v193_v40, %v193_v40  ;;  %v194_v44 = vmul.f32 0.25, %v189_v32 }
 0x17d   :  { %v330_v36 = vsel %vm328_vm2, %v3842_v34, 0  ;;  %v3863_v45 = vpack.c.bf16 %v191_v35, %v191_v35 }
 0x17e   :  { %3197 = vmatpush3.bf16.msra.mxu0 %v330_v36  ;;  %v3865_v46 = vpack.c.bf16 %v194_v44, %v194_v44 }
 0x17f   :  { %3208 = vmatprep.subr.bf16.mxu0 %v3671_v18  ;;  %v376_v47 = vsel %vm328_vm2, %v3863_v45, 0 }
 0x180   :  { %252 = vrot.lane.b32.xlu1 %v3848_v37, %s3668_s17 }
 0x1ee   :  { %v203_v38 = vpop.permute.xlu1 %202 }
 0x1ef   :  { %v209_v39 = vsel %vm204_vm3, %v203_v38, 0 }
 0x1f0   :  { %3185 = vmatpush3.bf16.xpose.msra.mxu1 %v209_v39 }
 0x1f1   :  { %3190 = vmatprep.subr.bf16.mxu1 %v3671_v18 }
 0x1f2   :  { %v253_v41 = vpop.permute.xlu1 %252 }
 0x1f3   :  { %v258_v43 = vsel %vm204_vm3, %v253_v41, 0 }
 0x1f7   :  { %3187 = vmatmul.mubr.msk.bf16.vlgmr.msra.gmra.mrb[4].mxu1 %vm204_vm3, %v3855_v42 }
 0x1f8   :  { %3191 = vmatpush3.bf16.xpose.msra.mxu1 %v258_v43  ;;  %3192 = vmatprep.mubr.msk.bf16.mxu1 %vm3672_vm1, %v3671_v18 }
 0x1f9   :  { %3202 = vmatprep.subr.bf16.mxu1 %v3671_v18 }
 0x1ff   :  { %3193 = vmatmul.mubr.msk.bf16.vlgmr.msra.gmra.mrb[8].mxu1 %vm204_vm3, %v3865_v46 }
 0x200   :  { %3203 = vmatpush3.bf16.msra.mxu1 %v376_v47  ;;  %3204 = vmatprep.mubr.msk.bf16.mxu1 %vm3672_vm1, %v3671_v18 }
 0x201   :  { %3214 = vmatprep.subr.bf16.mxu1 %v3671_v18 }
 0x2ca   :  { %v245_v48 = vpop.f32.mrb[4].mxu1 }
 0x2cb   :  { %v3188_v49 = vpop.f32.mrb[5].mxu1  ;;  %v301_v50 = vsel %vm300_vm4, %v245_v48, -inf }
 0x2cc   :  { %302 = vmax.xlane.f32.xlu0 %v301_v50  ;;  %v248_v51 = vpop.f32.mrb[6].mxu1 }
 0x2cd   :  { %v3189_v52 = vpop.f32.mrb[7].mxu1 }
 0x2d2   :  { %v294_v53 = vpop.f32.mrb[8].mxu1 }
 0x2d3   :  { %v3194_v54 = vpop.f32.mrb[9].mxu1  ;;  %v304_v55 = vsel %vm300_vm4, %v294_v53, -inf }
 0x2d4   :  { %305 = vmax.xlane.f32.xlu1 %v304_v55  ;;  %v297_v56 = vpop.f32.mrb[10].mxu1 }
 0x2d5   :  { %v3195_v57 = vpop.f32.mrb[11].mxu1 }
 0x2e5   :  { %421 = vrot.lane.b32.xlu1 %v3840_v31, %s3673_s24 }
 0x2e9   :  { %419 = vrot.lane.b32.xlu1 %v3855_v42, %s3674_s29 }
 0x2ed   :  { %470 = vrot.lane.b32.xlu1 %v3865_v46, %s3674_s29 }
 0x359   :  { %v303_v58 = vpop.xlane.xlu0 %302 }
 0x35a   :  { %v307_v59 = vsub.f32 %v245_v48, %v303_v58 }
 0x35c   :  { %v309_v60 = vmul.f32 1.442695, %v307_v59 }
 0x35e   :  { %3563 = vpow2.f32 %v309_v60 }
 0x361   :  { %v306_v61 = vpop.xlane.xlu1 %305 }
 0x362   :  { %v308_v62 = vsub.f32 %v294_v53, %v306_v61 }
 0x364   :  { %v311_v63 = vmul.f32 1.442695, %v308_v62 }
 0x365   :  { %v422_v9 = vpop.permute.xlu1 %421 }
 0x366   :  { %3565 = vpow2.f32 %v311_v63  ;;  %v427_v11 = vsel %vm204_vm3, %v422_v9, 0 }
 0x368   :  { %v3564_v0 = vpop.eup %3563 }
 0x369   :  { %v313_v2 = vsel %vm300_vm4, %v3564_v0, 0.0  ;;  %v420_v19 = vpop.permute.xlu1 %419 }
 0x36a   :  { %314 = vadd.xlane.f32.xlu0 %v313_v2 }
 0x36d   :  { %v471_v24 = vpop.permute.xlu1 %470 }
 0x370   :  { %v3566_v3 = vpop.eup %3565 }
 0x371   :  { %v316_v4 = vsel %vm300_vm4, %v3566_v3, 0.0 }
 0x372   :  { %317 = vadd.xlane.f32.xlu0 %v316_v4 }
 0x388   :  { %472 = vrot.lane.b32.xlu0 %v3848_v37, %s3673_s24 }
 0x3f7   :  { %v315_v5 = vpop.xlane.xlu0 %314 }
 0x3f8   :  { %3567 = vrcp.f32 %v315_v5 }
 0x3ff   :  { %v318_v6 = vpop.xlane.xlu0 %317 }
 0x400   :  { %3569 = vrcp.f32 %v318_v6 }
 0x402   :  { %v3568_v7 = vpop.eup %3567 }
 0x403   :  { %v321_v8 = vmul.f32 %v3568_v7, %v3564_v0  ;;  %v473_v14 = vpop.permute.xlu0 %472 }
 0x404   :  { %v478_v22 = vsel %vm204_vm3, %v473_v14, 0 }
 0x405   :  { %v323_v10 = vpack.c.bf16 %v321_v8, %v321_v8 }
 0x407   :  { %3199 = vmatmul.mubr.msk.bf16.vlgmr.msra.gmra.mrb[0].mxu0 %vm300_vm4, %v323_v10 }
 0x408   :  { %3209 = vmatpush3.bf16.xpose.msra.mxu0 %v427_v11  ;;  %3210 = vmatprep.mubr.msk.bf16.mxu0 %vm3672_vm1, %v3671_v18 }
 0x409   :  { %3220 = vmatprep.subr.bf16.mxu0 %v3671_v18 }
 0x40a   :  { %v3570_v12 = vpop.eup %3569 }
 0x40b   :  { %v322_v13 = vmul.f32 %v3570_v12, %v3566_v3 }
 0x40d   :  { %v324_v17 = vpack.c.bf16 %v322_v13, %v322_v13 }
 0x40f   :  { %3205 = vmatmul.mubr.msk.bf16.vlgmr.msra.gmra.mrb[12].mxu1 %vm300_vm4, %v324_v17  ;;  %3211 = vmatmul.mubr.msk.bf16.vlgmr.msra.gmra.mrb[4].mxu0 %vm204_vm3, %v420_v19 }
 0x410   :  { %3215 = vmatpush3.bf16.xpose.msra.mxu1 %v478_v22  ;;  %3216 = vmatprep.mubr.msk.bf16.mxu1 %vm3672_vm1, %v3671_v18 }
 0x411   :  { %3226 = vmatprep.subr.bf16.mxu1 %v3671_v18  ;;  %3222 = vmatprep.mubr.msk.bf16.mxu0 %vm3672_vm1, %v3671_v18 }
 0x417   :  { %3217 = vmatmul.mubr.msk.bf16.vlgmr.msra.gmra.mrb[16].mxu1 %vm204_vm3, %v471_v24 }
 0x418   :  { %3228 = vmatprep.mubr.msk.bf16.mxu1 %vm3672_vm1, %v3671_v18 }
 0x4da   :  { %v3902_v25 = vpop.f32.mrb[0].mxu0 }
 0x4db   :  { %v3200_v26 = vpop.f32.mrb[1].mxu0 }
 0x4dc   :  { %v369_v27 = vpop.f32.mrb[2].mxu0 }
 0x4dd   :  { %v3201_v28 = vpop.f32.mrb[3].mxu0 }
 0x4e2   :  { %v3904_v29 = vpop.f32.mrb[12].mxu1  ;;  %v463_v30 = vpop.f32.mrb[4].mxu0 }
 0x4e3   :  { %v3206_v32 = vpop.f32.mrb[13].mxu1  ;;  %v3212_v33 = vpop.f32.mrb[5].mxu0  ;;  %v520_v35 = vsel %vm300_vm4, %v463_v30, -inf }
 0x4e4   :  { %521 = vmax.xlane.f32.xlu0 %v520_v35  ;;  %v415_v36 = vpop.f32.mrb[14].mxu1  ;;  %v466_v38 = vpop.f32.mrb[6].mxu0 }
 0x4e5   :  { %v3207_v39 = vpop.f32.mrb[15].mxu1  ;;  %v3213_v40 = vpop.f32.mrb[7].mxu0 }
 0x4ea   :  { %v514_v41 = vpop.f32.mrb[16].mxu1 }
 0x4eb   :  { %v3218_v43 = vpop.f32.mrb[17].mxu1  ;;  %v523_v44 = vsel %vm300_vm4, %v514_v41, -inf }
 0x4ec   :  { %524 = vmax.xlane.f32.xlu1 %v523_v44  ;;  %v517_v47 = vpop.f32.mrb[18].mxu1 }
 0x4ed   :  { %v3219_v48 = vpop.f32.mrb[19].mxu1 }
 0x4fd   :  { %545 = vrot.lane.b32.xlu1 %v3842_v34, %s3674_s29 }
 0x501   :  { %644 = vrot.lane.b32.xlu1 %v3840_v31, %s3675_s30 }
 0x505   :  { %694 = vrot.lane.b32.xlu1 %v3848_v37, %s3675_s30 }
 0x509   :  { %692 = vrot.lane.b32.xlu1 %v3865_v46, %s3676_s0 }
 0x571   :  { %v522_v49 = vpop.xlane.xlu0 %521 }
 0x572   :  { %v526_v50 = vsub.f32 %v463_v30, %v522_v49 }
 0x574   :  { %v528_v51 = vmul.f32 1.442695, %v526_v50 }
 0x576   :  { %3571 = vpow2.f32 %v528_v51 }
 0x579   :  { %v525_v52 = vpop.xlane.xlu1 %524 }
 0x57a   :  { %v527_v53 = vsub.f32 %v514_v41, %v525_v52 }
 0x57c   :  { %v530_v54 = vmul.f32 1.442695, %v527_v53 }
 0x57d   :  { %v546_v55 = vpop.permute.xlu1 %545 }
 0x57e   :  { %3573 = vpow2.f32 %v530_v54  ;;  %v551_v56 = vsel %vm328_vm2, %v546_v55, 0 }
 0x57f   :  { %3221 = vmatpush3.bf16.msra.mxu0 %v551_v56 }
 0x580   :  { %v3572_v57 = vpop.eup %3571  ;;  %3232 = vmatprep.subr.bf16.mxu0 %v3671_v18 }
 0x581   :  { %v532_v58 = vsel %vm300_vm4, %v3572_v57, 0.0  ;;  %v645_v3 = vpop.permute.xlu1 %644 }
 0x582   :  { %533 = vadd.xlane.f32.xlu0 %v532_v58  ;;  %v650_v6 = vsel %vm204_vm3, %v645_v3, 0 }
 0x585   :  { %v695_v9 = vpop.permute.xlu1 %694 }
 0x586   :  { %v700_v12 = vsel %vm204_vm3, %v695_v9, 0 }
 0x588   :  { %v3574_v59 = vpop.eup %3573 }
 0x589   :  { %v535_v60 = vsel %vm300_vm4, %v3574_v59, 0.0  ;;  %v693_v13 = vpop.permute.xlu1 %692 }
 0x58a   :  { %536 = vadd.xlane.f32.xlu0 %v535_v60 }
 0x5a0   :  { %594 = vrot.lane.b32.xlu0 %v3863_v45, %s3674_s29 }
 0x5a4   :  { %642 = vrot.lane.b32.xlu0 %v3855_v42, %s3676_s0 }
 0x60f   :  { %v534_v61 = vpop.xlane.xlu0 %533 }
 0x610   :  { %3575 = vrcp.f32 %v534_v61 }
 0x617   :  { %v537_v62 = vpop.xlane.xlu0 %536 }
 0x618   :  { %3577 = vrcp.f32 %v537_v62 }
 0x61a   :  { %v3576_v63 = vpop.eup %3575 }
 0x61b   :  { %v540_v0 = vmul.f32 %v3576_v63, %v3572_v57  ;;  %v595_v2 = vpop.permute.xlu0 %594 }
 0x61c   :  { %v600_v4 = vsel %vm328_vm2, %v595_v2, 0 }
 0x61d   :  { %3227 = vmatpush3.bf16.msra.mxu1 %v600_v4  ;;  %v542_v5 = vpack.c.bf16 %v540_v0, %v540_v0 }
 0x61e   :  { %3238 = vmatprep.subr.bf16.mxu1 %v3671_v18 }
 0x61f   :  { %3223 = vmatmul.mubr.msk.bf16.vlgmr.msra.gmra.mrb[8].mxu0 %vm300_vm4, %v542_v5  ;;  %v643_v11 = vpop.permute.xlu0 %642 }
 0x620   :  { %3233 = vmatpush3.bf16.xpose.msra.mxu0 %v650_v6  ;;  %3234 = vmatprep.mubr.msk.bf16.mxu0 %vm3672_vm1, %v3671_v18 }
 0x621   :  { %3244 = vmatprep.subr.bf16.mxu0 %v3671_v18 }
 0x622   :  { %v3578_v7 = vpop.eup %3577 }
 0x623   :  { %v541_v8 = vmul.f32 %v3578_v7, %v3574_v59 }
 0x625   :  { %v543_v10 = vpack.c.bf16 %v541_v8, %v541_v8 }
 0x627   :  { %3229 = vmatmul.mubr.msk.bf16.vlgmr.msra.gmra.mrb[20].mxu1 %vm300_vm4, %v543_v10  ;;  %3235 = vmatmul.mubr.msk.bf16.vlgmr.msra.gmra.mrb[12].mxu0 %vm204_vm3, %v643_v11 }
 0x628   :  { %3239 = vmatpush3.bf16.xpose.msra.mxu1 %v700_v12  ;;  %3240 = vmatprep.mubr.msk.bf16.mxu1 %vm3672_vm1, %v3671_v18 }
 0x629   :  { %3250 = vmatprep.subr.bf16.mxu1 %v3671_v18  ;;  %3246 = vmatprep.mubr.msk.bf16.mxu0 %vm3672_vm1, %v3671_v18 }
 0x62f   :  { %3241 = vmatmul.mubr.msk.bf16.vlgmr.msra.gmra.mrb[24].mxu1 %vm204_vm3, %v693_v13 }
 0x630   :  { %3252 = vmatprep.mubr.msk.bf16.mxu1 %vm3672_vm1, %v3671_v18 }
 0x6f2   :  { %v3942_v14 = vpop.f32.mrb[8].mxu0 }
 0x6f3   :  { %v3224_v17 = vpop.f32.mrb[9].mxu0 }
 0x6f4   :  { %v590_v19 = vpop.f32.mrb[10].mxu0 }
 0x6f5   :  { %v3225_v22 = vpop.f32.mrb[11].mxu0 }
 0x6fa   :  { %v3944_v24 = vpop.f32.mrb[20].mxu1  ;;  %v686_v26 = vpop.f32.mrb[12].mxu0 }
 0x6fb   :  { %v3477_v27 = vpack.i.bf16 %v3944_v24, %v3942_v14  ;;  %v3230_v28 = vpop.f32.mrb[21].mxu1  ;;  %v3236_v30 = vpop.f32.mrb[13].mxu0  ;;  %v742_v32 = vsel %vm300_vm4, %v686_v26, -inf }
 0x6fc   :  { %743 = vmax.xlane.f32.xlu0 %v742_v32  ;;  %v639_v33 = vpop.f32.mrb[22].mxu1  ;;  %v689_v35 = vpop.f32.mrb[14].mxu0 }
 0x6fd   :  { %v3231_v36 = vpop.f32.mrb[23].mxu1  ;;  %v3237_v38 = vpop.f32.mrb[15].mxu0 }
 0x702   :  { %v736_v39 = vpop.f32.mrb[24].mxu1 }
 0x703   :  { %v3242_v40 = vpop.f32.mrb[25].mxu1  ;;  %v745_v41 = vsel %vm300_vm4, %v736_v39, -inf }
 0x704   :  { %746 = vmax.xlane.f32.xlu1 %v745_v41  ;;  %v739_v43 = vpop.f32.mrb[26].mxu1 }
 0x705   :  { %v3243_v44 = vpop.f32.mrb[27].mxu1 }
 0x715   :  { %766 = vrot.lane.b32.xlu1 %v3842_v34, %s3676_s0 }
 0x719   :  { %864 = vrot.lane.b32.xlu1 %v3840_v31, %s3677_s15 }
 0x71d   :  { %914 = vrot.lane.b32.xlu1 %v3848_v37, %s3677_s15 }
 0x721   :  { %912 = vrot.lane.b32.xlu1 %v3865_v46, %s3678_s18 }
 0x789   :  { %v744_v47 = vpop.xlane.xlu0 %743 }
 0x78a   :  { %v748_v48 = vsub.f32 %v686_v26, %v744_v47 }
 0x78c   :  { %v750_v49 = vmul.f32 1.442695, %v748_v48 }
 0x78e   :  { %3579 = vpow2.f32 %v750_v49 }
 0x791   :  { %v747_v50 = vpop.xlane.xlu1 %746 }
 0x792   :  { %v749_v51 = vsub.f32 %v736_v39, %v747_v50 }
 0x794   :  { %v752_v52 = vmul.f32 1.442695, %v749_v51 }
 0x795   :  { %v767_v53 = vpop.permute.xlu1 %766 }
 0x796   :  { %3581 = vpow2.f32 %v752_v52  ;;  %v772_v54 = vsel %vm328_vm2, %v767_v53, 0 }
 0x797   :  { %3245 = vmatpush3.bf16.msra.mxu0 %v772_v54 }
 0x798   :  { %v3580_v31 = vpop.eup %3579  ;;  %3256 = vmatprep.subr.bf16.mxu0 %v3671_v18 }
 0x799   :  { %v754_v37 = vsel %vm300_vm4, %v3580_v31, 0.0  ;;  %v865_v61 = vpop.permute.xlu1 %864 }
 0x79a   :  { %755 = vadd.xlane.f32.xlu0 %v754_v37  ;;  %v870_v0 = vsel %vm204_vm3, %v865_v61, 0  ;;  %v3522_v61 = vld [vmem:[%s4420_s4 + $0x18] sm:$0xff]  }
 0x79d   :  { %v915_v3 = vpop.permute.xlu1 %914 }
 0x79e   :  { %v920_v6 = vsel %vm204_vm3, %v915_v3, 0 }
 0x7a0   :  { %v3582_v55 = vpop.eup %3581 }
 0x7a1   :  { %v757_v46 = vsel %vm300_vm4, %v3582_v55, 0.0  ;;  %v913_v7 = vpop.permute.xlu1 %912 }
 0x7a2   :  { %758 = vadd.xlane.f32.xlu0 %v757_v46 }
 0x7b8   :  { %814 = vrot.lane.b32.xlu0 %v3863_v45, %s3676_s0 }
 0x7bc   :  { %862 = vrot.lane.b32.xlu0 %v3855_v42, %s3678_s18 }
 0x827   :  { %v756_v56 = vpop.xlane.xlu0 %755 }
 0x828   :  { %3583 = vrcp.f32 %v756_v56 }
 0x82f   :  { %v759_v57 = vpop.xlane.xlu0 %758 }
 0x830   :  { %3585 = vrcp.f32 %v759_v57 }
 0x832   :  { %v3584_v58 = vpop.eup %3583 }
 0x833   :  { %v762_v59 = vmul.f32 %v3584_v58, %v3580_v31  ;;  %v815_v60 = vpop.permute.xlu0 %814  ;;  %v3519_v58 = vld [vmem:[%s4420_s4] sm:$0xff]  }
 0x834   :  { %v820_v62 = vsel %vm328_vm2, %v815_v60, 0  ;;  %v3521_v60 = vld [vmem:[%s4420_s4 + $0x10] sm:$0xff]  }
 0x835   :  { %3251 = vmatpush3.bf16.msra.mxu1 %v820_v62  ;;  %v764_v63 = vpack.c.bf16 %v762_v59, %v762_v59  ;;  %v3520_v59 = vld [vmem:[%s4420_s4 + $0x8] sm:$0xff]  }
 0x836   :  { %3262 = vmatprep.subr.bf16.mxu1 %v3671_v18 }
 0x837   :  { %3247 = vmatmul.mubr.msk.bf16.vlgmr.msra.gmra.mrb[16].mxu0 %vm300_vm4, %v764_v63  ;;  %v863_v5 = vpop.permute.xlu0 %862 }
 0x838   :  { %3257 = vmatpush3.bf16.xpose.msra.mxu0 %v870_v0  ;;  %3258 = vmatprep.mubr.msk.bf16.mxu0 %vm3672_vm1, %v3671_v18 }
 0x839   :  { %3268 = vmatprep.subr.bf16.mxu0 %v3671_v18 }
 0x83a   :  { %v3586_v42 = vpop.eup %3585 }
 0x83b   :  { %v763_v2 = vmul.f32 %v3586_v42, %v3582_v55 }
 0x83d   :  { %v765_v4 = vpack.c.bf16 %v763_v2, %v763_v2 }
 0x83f   :  { %3253 = vmatmul.mubr.msk.bf16.vlgmr.msra.gmra.mrb[28].mxu1 %vm300_vm4, %v765_v4  ;;  %3259 = vmatmul.mubr.msk.bf16.vlgmr.msra.gmra.mrb[20].mxu0 %vm204_vm3, %v863_v5 }
 0x840   :  { %3263 = vmatpush3.bf16.xpose.msra.mxu1 %v920_v6  ;;  %3264 = vmatprep.mubr.msk.bf16.mxu1 %vm3672_vm1, %v3671_v18 }
 0x841   :  { %3274 = vmatprep.subr.bf16.mxu1 %v3671_v18  ;;  %3270 = vmatprep.mubr.msk.bf16.mxu0 %vm3672_vm1, %v3671_v18 }
 0x847   :  { %3265 = vmatmul.mubr.msk.bf16.vlgmr.msra.gmra.mrb[32].mxu1 %vm204_vm3, %v913_v7 }
 0x848   :  { %3276 = vmatprep.mubr.msk.bf16.mxu1 %vm3672_vm1, %v3671_v18 }
 0x90a   :  { %v808_v8 = vpop.f32.mrb[16].mxu0 }
 0x90b   :  { %v3248_v9 = vpop.f32.mrb[17].mxu0 }
 0x90c   :  { %v811_v10 = vpop.f32.mrb[18].mxu0 }
 0x90d   :  { %v3249_v11 = vpop.f32.mrb[19].mxu0 }
 0x912   :  { %v856_v12 = vpop.f32.mrb[28].mxu1  ;;  %v906_v13 = vpop.f32.mrb[20].mxu0 }
 0x913   :  { %v3482_v17 = vpack.i.bf16 %v856_v12, %v808_v8  ;;  %v3254_v19 = vpop.f32.mrb[29].mxu1  ;;  %v3260_v22 = vpop.f32.mrb[21].mxu0  ;;  %v962_v26 = vsel %vm300_vm4, %v906_v13, -inf }
 0x914   :  { %963 = vmax.xlane.f32.xlu0 %v962_v26  ;;  %v859_v28 = vpop.f32.mrb[30].mxu1  ;;  %v909_v30 = vpop.f32.mrb[22].mxu0 }
 0x915   :  { %v3255_v32 = vpop.f32.mrb[31].mxu1  ;;  %v3261_v33 = vpop.f32.mrb[23].mxu0 }
 0x91a   :  { %v956_v35 = vpop.f32.mrb[32].mxu1 }
 0x91b   :  { %v3266_v36 = vpop.f32.mrb[33].mxu1  ;;  %v965_v38 = vsel %vm300_vm4, %v956_v35, -inf }
 0x91c   :  { %966 = vmax.xlane.f32.xlu1 %v965_v38  ;;  %v959_v39 = vpop.f32.mrb[34].mxu1 }
 0x91d   :  { %v3267_v40 = vpop.f32.mrb[35].mxu1 }
 0x92d   :  { %986 = vrot.lane.b32.xlu1 %v3842_v34, %s3678_s18 }
 0x931   :  { %3478 = vrot.lane.b32.xlu1 %v3477_v27, %s3677_s15 }
 0x935   :  { %3483 = vrot.lane.b32.xlu1 %v3482_v17, %s3675_s30 }
 0x9a1   :  { %v964_v41 = vpop.xlane.xlu0 %963 }
 0x9a2   :  { %v968_v43 = vsub.f32 %v906_v13, %v964_v41 }
 0x9a4   :  { %v970_v44 = vmul.f32 1.442695, %v968_v43 }
 0x9a6   :  { %3587 = vpow2.f32 %v970_v44 }
 0x9a9   :  { %v967_v47 = vpop.xlane.xlu1 %966 }
 0x9aa   :  { %v969_v48 = vsub.f32 %v956_v35, %v967_v47 }
 0x9ac   :  { %v972_v49 = vmul.f32 1.442695, %v969_v48 }
 0x9ad   :  { %v987_v50 = vpop.permute.xlu1 %986 }
 0x9ae   :  { %3589 = vpow2.f32 %v972_v49  ;;  %v992_v51 = vsel %vm328_vm2, %v987_v50, 0 }
 0x9af   :  { %3269 = vmatpush3.bf16.msra.mxu0 %v992_v51 }
 0x9b0   :  { %v3588_v34 = vpop.eup %3587  ;;  %3280 = vmatprep.subr.bf16.mxu0 %v3671_v18 }
 0x9b1   :  { %v974_v14 = vsel %vm300_vm4, %v3588_v34, 0.0  ;;  %v3479_v7 = vpop.permute.xlu1 %3478 }
 0x9b2   :  { %975 = vadd.xlane.f32.xlu0 %v974_v14  ;;  %v3481_v9 = vunpack.i.h.bf16 %v3479_v7  ;;  %v3480_v10 = vunpack.i.l.bf16 %v3479_v7  ;;  %v2972_v7 = vld [vmem:[%s4423_s7] ss:$0 sm:$0xff] }
 0x9b4   :  { %v1107_v17 = vsel %vm204_vm3, %v3904_v29, %v3481_v9  ;;  %v1106_v19 = vsel %vm204_vm3, %v3902_v25, %v3480_v10  ;;  %v2965_v25 = vld [vmem:[%s4421_s5] ss:$0 sm:$0xff] }
 0x9b5   :  { %v3484_v8 = vpop.permute.xlu1 %3483 }
 0x9b6   :  { %v3486_v11 = vunpack.i.h.bf16 %v3484_v8  ;;  %v3485_v12 = vunpack.i.l.bf16 %v3484_v8 }
 0x9b8   :  { %v3590_v24 = vpop.eup %3589  ;;  %v1109_v28 = vsel %vm1108_vm5, %v1106_v19, %v3485_v12  ;;  %v1110_v30 = vsel %vm1108_vm5, %v1107_v17, %v3486_v11  ;;  %v3533_v12 = vld [vmem:[%s4426_s10 + $0x30] sm:$0xff]   ;;  %v2973_v17 = vld [vmem:[%s4425_s9] ss:$0 sm:$0xff] }
 0x9b9   :  { %v977_v27 = vsel %vm300_vm4, %v3590_v24, 0.0 }
 0x9ba   :  { %978 = vadd.xlane.f32.xlu0 %v977_v27 }
 0x9d0   :  { %1034 = vrot.lane.b32.xlu0 %v3863_v45, %s3678_s18 }
 0xa3f   :  { %v976_v52 = vpop.xlane.xlu0 %975 }
 0xa40   :  { %3591 = vrcp.f32 %v976_v52 }
 0xa47   :  { %v979_v53 = vpop.xlane.xlu0 %978 }
 0xa48   :  { %3593 = vrcp.f32 %v979_v53 }
 0xa4a   :  { %v3592_v54 = vpop.eup %3591 }
 0xa4b   :  { %v982_v31 = vmul.f32 %v3592_v54, %v3588_v34  ;;  %v1035_v37 = vpop.permute.xlu0 %1034  ;;  %v3523_v54 = vld [vmem:[#allocation3] sm:$0xff]  }
 0xa4c   :  { %v1040_v55 = vsel %vm328_vm2, %v1035_v37, 0  ;;  %v3526_v37 = vld [vmem:[#allocation3 + $0x18] sm:$0xff]  }
 0xa4d   :  { %3275 = vmatpush3.bf16.msra.mxu1 %v1040_v55  ;;  %v984_v46 = vpack.c.bf16 %v982_v31, %v982_v31  ;;  %v3525_v31 = vld [vmem:[#allocation3 + $0x10] sm:$0xff]   ;;  %v3527_v55 = vld [vmem:[%s4426_s10] sm:$0xff]  }
 0xa4e   :  { %3292 = vmatprep.subr.bf16.mxu1 %v3671_v18 }
 0xa4f   :  { %3271 = vmatmul.mubr.msk.bf16.vlgmr.msra.gmra.mrb[24].mxu0 %vm300_vm4, %v984_v46  ;;  %v3528_v46 = vld [vmem:[%s4426_s10 + $0x8] sm:$0xff]  }
 0xa50   :  { %3288 = vmatprep.mubr.msk.bf16.mxu0 %vm3672_vm1, %v3671_v18  ;;  %3281 = vmatpush3.bf16.msra.mxu0 %v3519_v58  ;;  %v3532_v58 = vld [vmem:[%s4426_s10 + $0x28] sm:$0xff]  }
 0xa51   :  { %3282 = vmatprep.subr.bf16.mxu0 %v3671_v18 }
 0xa52   :  { %v3594_v56 = vpop.eup %3593 }
 0xa53   :  { %v983_v45 = vmul.f32 %v3594_v56, %v3590_v24  ;;  %v3529_v56 = vld [vmem:[%s4426_s10 + $0x10] sm:$0xff]  }
 0xa54   :  { %3283 = vmatpush3.bf16.msra.mxu0 %v3520_v59 }
 0xa55   :  { %v985_v57 = vpack.c.bf16 %v983_v45, %v983_v45  ;;  %3284 = vmatprep.subr.bf16.mxu0 %v3671_v18  ;;  %v3530_v45 = vld [vmem:[%s4426_s10 + $0x18] sm:$0xff]  }
 0xa57   :  { %3277 = vmatmul.mubr.msk.bf16.vlgmr.msra.gmra.mrb[36].mxu1 %vm300_vm4, %v985_v57  ;;  %v3531_v57 = vld [vmem:[%s4426_s10 + $0x20] sm:$0xff]  }
 0xa58   :  { %3300 = vmatprep.mubr.msk.bf16.mxu1 %vm3672_vm1, %v3671_v18  ;;  %3285 = vmatpush3.bf16.msra.mxu0 %v3521_v60 }
 0xa59   :  { %3286 = vmatprep.subr.bf16.mxu0 %v3671_v18  ;;  %3293 = vmatpush3.bf16.msra.mxu1 %v3523_v54  ;;  %v3537_v54 = vld [vmem:[%s4418_s2 + $0x44] ss:$8 sps:$4 sm:$0xff]  }
 0xa5a   :  { %3294 = vmatprep.subr.bf16.mxu1 %v3671_v18 }
 0xa5c   :  { %3287 = vmatpush3.bf16.msra.mxu0 %v3522_v61 }
 0xa5d   :  { %3304 = vmatprep.subr.bf16.mxu0 %v3671_v18 }
 0xb22   :  { %v1028_v62 = vpop.f32.mrb[24].mxu0 }
 0xb23   :  { %v3272_v63 = vpop.f32.mrb[25].mxu0 }
 0xb24   :  { %v1031_v0 = vpop.f32.mrb[26].mxu0 }
 0xb25   :  { %v3273_v42 = vpop.f32.mrb[27].mxu0 }
 0xb2a   :  { %v1076_v2 = vpop.f32.mrb[36].mxu1 }
 0xb2b   :  { %v3487_v3 = vpack.i.bf16 %v1076_v2, %v1028_v62  ;;  %v3278_v4 = vpop.f32.mrb[37].mxu1  ;;  %v2971_v2 = vld [vmem:[%s4422_s6] ss:$0 sm:$0xff] }
 0xb2c   :  { %v1079_v5 = vpop.f32.mrb[38].mxu1 }
 0xb2d   :  { %3488 = vrot.lane.b32.xlu0 %v3487_v3, %s3673_s24  ;;  %v3279_v6 = vpop.f32.mrb[39].mxu1 }
 0xb9f   :  { %v3489_v13 = vpop.permute.xlu0 %3488 }
 0xba0   :  { %v3491_v22 = vunpack.i.h.bf16 %v3489_v13  ;;  %v3490_v26 = vunpack.i.l.bf16 %v3489_v13  ;;  %v3534_v13 = vld [vmem:[%s4426_s10 + $0x38] sm:$0xff]  }
 0xba2   :  { %v1113_v32 = vsel %vm1111_vm6, %v1110_v30, %v3491_v22  ;;  %v1112_v33 = vsel %vm1111_vm6, %v1109_v28, %v3490_v26 }
 0xba3   :  { %v1114_v35 = vpack.c.bf16 %v1113_v32, %v1112_v33 }
 0xba5   :  { %3289 = vmatmul.mubr.msk.bf16.vlgmr.msra.gmra.mrb[28].mxu0 %vm146_vm0, %v1114_v35 }
 0xba6   :  { %3320 = vmatprep.mubr.msk.bf16.mxu0 %vm3672_vm1, %v3671_v18  ;;  %3305 = vmatpush3.bf16.msra.mxu0 %v3527_v55  ;;  %v3543_v55 = vld [vmem:[%s4418_s2 + $0x64] ss:$8 sps:$4 sm:$0xff]  }
 0xba7   :  { %3306 = vmatprep.subr.bf16.mxu0 %v3671_v18 }
 0xbaa   :  { %3307 = vmatpush3.bf16.msra.mxu0 %v3528_v46  ;;  %v3541_v46 = vld [vmem:[%s4418_s2 + $0x60] ss:$8 sps:$4 sm:$0xff]  }
 0xbab   :  { %3308 = vmatprep.subr.bf16.mxu0 %v3671_v18 }
 0xbae   :  { %3309 = vmatpush3.bf16.msra.mxu0 %v3529_v56  ;;  %v3544_v56 = vld [vmem:[%s4418_s2 + $0x70] ss:$8 sps:$4 sm:$0xff]  }
 0xbaf   :  { %3310 = vmatprep.subr.bf16.mxu0 %v3671_v18 }
 0xbb2   :  { %3311 = vmatpush3.bf16.msra.mxu0 %v3530_v45  ;;  %v3546_v45 = vld [vmem:[%s4418_s2 + $0x74] ss:$8 sps:$4 sm:$0xff]  }
 0xbb3   :  { %3312 = vmatprep.subr.bf16.mxu0 %v3671_v18 }
 0xbb6   :  { %3313 = vmatpush3.bf16.msra.mxu0 %v3531_v57 }
 0xbb7   :  { %3314 = vmatprep.subr.bf16.mxu0 %v3671_v18 }
 0xbba   :  { %3315 = vmatpush3.bf16.msra.mxu0 %v3532_v58 }
 0xbbb   :  { %3316 = vmatprep.subr.bf16.mxu0 %v3671_v18 }
 0xbbe   :  { %3317 = vmatpush3.bf16.msra.mxu0 %v3533_v12 }
 0xbbf   :  { %3318 = vmatprep.subr.bf16.mxu0 %v3671_v18 }
 0xbc2   :  { %3319 = vmatpush3.bf16.msra.mxu0 %v3534_v13 }
 0xbc3   :  { %3336 = vmatprep.subr.bf16.mxu0 %v3671_v18 }
 0xc78   :  { %v1191_v29 = vpop.f32.mrb[28].mxu0 }
 0xc79   :  { %v1192_v36 = vadd.f32 %v2965_v25, %v1191_v29  ;;  %v3290_v38 = vpop.f32.mrb[29].mxu0 }
 0xc7a   :  { %v1194_v39 = vpop.f32.mrb[30].mxu0 }
 0xc7b   :  { %v1195_v40 = vadd.f32 %v2965_v25, %v1194_v39  ;;  %v3291_v41 = vpop.f32.mrb[31].mxu0  ;;  %v1198_v43 = vadd.f32 %v1192_v36, %v3816_v15  ;;  %v2979_v25 = vld [vmem:[%s4427_s11] ss:$0 sm:$0xff] }
 0xc7d   :  { %v1202_v44 = vsel %vm146_vm0, %v1198_v43, 0.0  ;;  %v1199_v47 = vadd.f32 %v1195_v40, %v3818_v16  ;;  %v3524_v16 = vld [vmem:[#allocation3 + $0x8] sm:$0xff]  }
 0xc7e   :  { %1203 = vadd.xlane.f32.xlu1 %v1202_v44  ;;  %3295 = vmatpush3.bf16.msra.mxu1 %v3524_v16  ;;  %v3535_v16 = vld [vmem:[%s4418_s2 + $0x40] ss:$8 sps:$4 sm:$0xff]  }
 0xc7f   :  { %v1205_v48 = vsel %vm146_vm0, %v1199_v47, 0.0  ;;  %3296 = vmatprep.subr.bf16.mxu1 %v3671_v18 }
 0xc80   :  { %1206 = vadd.xlane.f32.xlu0 %v1205_v48 }
 0xc82   :  { %3297 = vmatpush3.bf16.msra.mxu1 %v3525_v31  ;;  %v3540_v31 = vld [vmem:[%s4418_s2 + $0x54] ss:$8 sps:$4 sm:$0xff]  }
 0xc83   :  { %3298 = vmatprep.subr.bf16.mxu1 %v3671_v18 }
 0xc86   :  { %3299 = vmatpush3.bf16.msra.mxu1 %v3526_v37  ;;  %v3538_v37 = vld [vmem:[%s4418_s2 + $0x50] ss:$8 sps:$4 sm:$0xff]  }
 0xc87   :  { %1556 = vmatprep.subr.bf16.mxu1 %v3537_v54 }
 0xd0b   :  { %v1204_v49 = vpop.xlane.xlu1 %1203 }
 0xd0c   :  { %v1209_v50 = vmul.f32 0.015625, %v1204_v49 }
 0xd0d   :  { %v1207_v51 = vpop.xlane.xlu0 %1206 }
 0xd0e   :  { %v1211_v34 = vsub.f32 %v1198_v43, %v1209_v50  ;;  %v1210_v14 = vmul.f32 0.015625, %v1207_v51 }
 0xd10   :  { %v1212_v24 = vsub.f32 %v1199_v47, %v1210_v14  ;;  %v1213_v27 = vmul.f32 %v1211_v34, %v1211_v34 }
 0xd12   :  { %v1215_v52 = vsel %vm146_vm0, %v1213_v27, 0.0  ;;  %v1214_v53 = vmul.f32 %v1212_v24, %v1212_v24 }
 0xd13   :  { %1216 = vadd.xlane.f32.xlu0 %v1215_v52 }
 0xd14   :  { %v1218_v15 = vsel %vm146_vm0, %v1214_v53, 0.0 }
 0xd15   :  { %1219 = vadd.xlane.f32.xlu1 %v1218_v15 }
 0xda0   :  { %v1217_v59 = vpop.xlane.xlu0 %1216 }
 0xda1   :  { %v1221_v60 = vmul.f32 0.015625, %v1217_v59 }
 0xda2   :  { %v1220_v61 = vpop.xlane.xlu1 %1219 }
 0xda3   :  { %v1223_v62 = vadd.f32 1e-05, %v1221_v60  ;;  %v1222_v63 = vmul.f32 0.015625, %v1220_v61 }
 0xda5   :  { %3595 = vrsqrt.f32 %v1223_v62  ;;  %v1224_v0 = vadd.f32 1e-05, %v1222_v63 }
 0xda7   :  { %3597 = vrsqrt.f32 %v1224_v0  ;;  %v2988_v0 = vld [vmem:[%s4428_s12] ss:$0 sm:$0xff] }
 0xdaf   :  { %v3596_v42 = vpop.eup %3595 }
 0xdb0   :  { %v1227_v3 = vmul.f32 %v3596_v42, %v1211_v34 }
 0xdb1   :  { %v3598_v4 = vpop.eup %3597 }
 0xdb2   :  { %v1235_v5 = vmul.f32 %v2971_v2, %v1227_v3  ;;  %v1228_v6 = vmul.f32 %v3598_v4, %v1212_v24 }
 0xdb4   :  { %v1236_v8 = vmul.f32 %v2971_v2, %v1228_v6  ;;  %v1243_v9 = vadd.f32 %v2972_v7, %v1235_v5  ;;  %v2989_v5 = vld [vmem:[%s4429_s13] ss:$0 sm:$0xff] }
 0xdb6   :  { %v1244_v10 = vadd.f32 %v2972_v7, %v1236_v8 }
 0xdb8   :  { %v1245_v11 = vpack.c.bf16 %v1244_v10, %v1243_v9 }
 0xdba   :  { %3301 = vmatmul.mubr.msk.bf16.vlgmr.msra.gmra.mrb[40].mxu1 %vm146_vm0, %v1245_v11 }
 0xdbb   :  { %1588 = vmatprep.mubr.bf16.mxu1 %v3670_v1  ;;  %1557 = vmatpush1.bf16.msra.mxu1 %v3535_v16 }
 0xdbc   :  { %1558 = vmatprep.subr.bf16.mxu1 %v3540_v31 }
 0xdbf   :  { %1559 = vmatpush1.bf16.msra.mxu1 %v3538_v37 }
 0xdc0   :  { %1560 = vmatprep.subr.bf16.mxu1 %v3543_v55 }
 0xdc3   :  { %1561 = vmatpush1.bf16.msra.mxu1 %v3541_v46 }
 0xdc4   :  { %1562 = vmatprep.subr.bf16.mxu1 %v3546_v45 }
 0xdc7   :  { %1563 = vmatpush1.bf16.msra.mxu1 %v3544_v56 }
 0xdc8   :  { %3324 = vmatprep.subr.bf16.mxu1 %v3671_v18 }
 0xe8d   :  { %v1322_v19 = vpop.f32.mrb[40].mxu1 }
 0xe8e   :  { %v1323_v1 = vadd.f32 %v2973_v17, %v1322_v19  ;;  %v3302_v22 = vpop.f32.mrb[41].mxu1 }
 0xe8f   :  { %v1325_v26 = vpop.f32.mrb[42].mxu1 }
 0xe90   :  { %v1326_v28 = vadd.f32 %v2973_v17, %v1325_v26  ;;  %v3303_v30 = vpop.f32.mrb[43].mxu1  ;;  %v1329_v32 = vmax.f32 %v1323_v1, 0.0 }
 0xe92   :  { %v1330_v33 = vmax.f32 %v1326_v28, 0.0 }
 0xe94   :  { %v1331_v35 = vpack.c.bf16 %v1330_v33, %v1329_v32 }
 0xe96   :  { %3321 = vmatmul.mubr.bf16.vlgmr.msra.gmra.mrb[32].mxu0 %v1331_v35 }
 0xe97   :  { %3338 = vmatprep.mubr.msk.bf16.mxu0 %vm3672_vm1, %v3671_v18 }
 0xf69   :  { %v1437_v29 = vpop.f32.mrb[32].mxu0 }
 0xf6a   :  { %v1438_v36 = vadd.f32 %v2979_v25, %v1437_v29  ;;  %v3322_v38 = vpop.f32.mrb[33].mxu0 }
 0xf6b   :  { %v1440_v39 = vpop.f32.mrb[34].mxu0 }
 0xf6c   :  { %v1441_v40 = vadd.f32 %v2979_v25, %v1440_v39  ;;  %v3323_v41 = vpop.f32.mrb[35].mxu0  ;;  %v1444_v43 = vadd.f32 %v1438_v36, %v1243_v9 }
 0xf6e   :  { %v1448_v44 = vsel %vm146_vm0, %v1444_v43, 0.0  ;;  %v1445_v47 = vadd.f32 %v1441_v40, %v1244_v10  ;;  %v2998_v10 = vld [vmem:[%s4419_s3 + $0x2] sm:$0x3] }
 0xf6f   :  { %1449 = vadd.xlane.f32.xlu0 %v1448_v44  ;;  %v1506_v11 = vrot.slane %v2998_v10, %v98_v21  ;;  %v1510_v12 = vrot.slane %v2998_v10, %v102_v23 }
 0xf70   :  { %v1451_v48 = vsel %vm146_vm0, %v1445_v47, 0.0 }
 0xf71   :  { %1452 = vadd.xlane.f32.xlu1 %v1451_v48 }
 0xffc   :  { %v1450_v49 = vpop.xlane.xlu0 %1449 }
 0xffd   :  { %v1454_v50 = vmul.f32 0.015625, %v1450_v49 }
 0xffe   :  { %v1453_v51 = vpop.xlane.xlu1 %1452 }
 0xfff   :  { %v1456_v34 = vsub.f32 %v1444_v43, %v1454_v50  ;;  %v1455_v14 = vmul.f32 0.015625, %v1453_v51 }
0x1001   :  { %v1457_v24 = vsub.f32 %v1445_v47, %v1455_v14  ;;  %v1458_v27 = vmul.f32 %v1456_v34, %v1456_v34 }
0x1003   :  { %v1460_v52 = vsel %vm146_vm0, %v1458_v27, 0.0  ;;  %v1459_v53 = vmul.f32 %v1457_v24, %v1457_v24 }
0x1004   :  { %1461 = vadd.xlane.f32.xlu0 %v1460_v52 }
0x1005   :  { %v1463_v15 = vsel %vm146_vm0, %v1459_v53, 0.0 }
0x1006   :  { %1464 = vadd.xlane.f32.xlu1 %v1463_v15 }
0x1091   :  { %v1462_v57 = vpop.xlane.xlu0 %1461 }
0x1092   :  { %v1466_v58 = vmul.f32 0.015625, %v1462_v57 }
0x1093   :  { %v1465_v59 = vpop.xlane.xlu1 %1464 }
0x1094   :  { %v1468_v60 = vadd.f32 1e-05, %v1466_v58  ;;  %v1467_v61 = vmul.f32 0.015625, %v1465_v59 }
0x1096   :  { %3599 = vrsqrt.f32 %v1468_v60  ;;  %v1469_v62 = vadd.f32 1e-05, %v1467_v61 }
0x1098   :  { %3601 = vrsqrt.f32 %v1469_v62 }
0x10a0   :  { %v3600_v63 = vpop.eup %3599 }
0x10a1   :  { %v1472_v42 = vmul.f32 %v3600_v63, %v1456_v34 }
0x10a2   :  { %v3602_v2 = vpop.eup %3601 }
0x10a3   :  { %v1480_v3 = vmul.f32 %v2988_v0, %v1472_v42  ;;  %v1473_v4 = vmul.f32 %v3602_v2, %v1457_v24 }
0x10a5   :  { %v1481_v6 = vmul.f32 %v2988_v0, %v1473_v4  ;;  %v4130_v7 = vadd.f32 %v2989_v5, %v1480_v3 }
0x10a7   :  { %v4132_v8 = vadd.f32 %v2989_v5, %v1481_v6 }
0x10a9   :  { %v1490_v9 = vpack.c.bf16 %v4132_v8, %v4130_v7 }
0x10ab   :  { %3007 = vmatmul.mubr.msk.bf16.vlgmr.msra.gmra.mrb[44].mxu1 %vm146_vm0, %v1490_v9 }
0x10ac   :  { %3326 = vmatprep.mubr.msk.bf16.mxu1 %vm3672_vm1, %v3671_v18 }
0x117e   :  { %v1590_v13 = vpop.f32.mrb[44].mxu1 }
0x117f   :  { %v1591_v17 = vadd.f32 %v1590_v13, %v1506_v11  ;;  %v1592_v19 = vpop.f32.mrb[45].mxu1 }
0x1180   :  { %v1593_v1 = vadd.f32 %v1592_v19, %v1510_v12  ;;  %v1594_v22 = vpop.f32.mrb[46].mxu1 }
0x1181   :  { %v4146_v26 = vpack.c.bf16 %v1591_v17, %v1591_v17  ;;  %v1595_v28 = vadd.f32 %v1594_v22, %v1506_v11  ;;  %v1596_v30 = vpop.f32.mrb[47].mxu1  ;;  %v1599_v25 = vmul.f32 0.25, %v1591_v17 }
0x1182   :  { %v4148_v32 = vpack.c.bf16 %v1593_v1, %v1593_v1  ;;  %v1597_v33 = vadd.f32 %v1596_v30, %v1510_v12 }
0x1183   :  { %v4150_v35 = vpack.c.bf16 %v1595_v28, %v1595_v28  ;;  %1608 = vrot.lane.b32.xlu0 %v4146_v26, %s3668_s17  ;;  %v4161_v36 = vpack.c.bf16 %v1599_v25, %v1599_v25  ;;  %v1600_v39 = vmul.f32 0.25, %v1595_v28 }
0x1184   :  { %v1733_v20 = vsel %vm328_vm2, %v4148_v32, 0  ;;  %v4169_v40 = vpack.c.bf16 %v1597_v33, %v1597_v33 }
0x1185   :  { %1657 = vrot.lane.b32.xlu1 %v4150_v35, %s3668_s17  ;;  %3337 = vmatpush3.bf16.msra.mxu0 %v1733_v20  ;;  %v4171_v41 = vpack.c.bf16 %v1600_v39, %v1600_v39 }
0x1186   :  { %3348 = vmatprep.subr.bf16.mxu0 %v3671_v18  ;;  %v1779_v43 = vsel %vm328_vm2, %v4169_v40, 0 }
0x11f5   :  { %v1609_v21 = vpop.permute.xlu0 %1608 }
0x11f6   :  { %v1614_v23 = vsel %vm204_vm3, %v1609_v21, 0 }
0x11f7   :  { %3325 = vmatpush3.bf16.xpose.msra.mxu1 %v1614_v23  ;;  %v1658_v29 = vpop.permute.xlu1 %1657 }
0x11f8   :  { %3330 = vmatprep.subr.bf16.mxu1 %v3671_v18  ;;  %v1663_v38 = vsel %vm204_vm3, %v1658_v29, 0 }
0x11fe   :  { %3327 = vmatmul.mubr.msk.bf16.vlgmr.msra.gmra.mrb[48].mxu1 %vm204_vm3, %v4161_v36 }
0x11ff   :  { %3331 = vmatpush3.bf16.xpose.msra.mxu1 %v1663_v38  ;;  %3332 = vmatprep.mubr.msk.bf16.mxu1 %vm3672_vm1, %v3671_v18 }
0x1200   :  { %3342 = vmatprep.subr.bf16.mxu1 %v3671_v18 }
0x1206   :  { %3333 = vmatmul.mubr.msk.bf16.vlgmr.msra.gmra.mrb[52].mxu1 %vm204_vm3, %v4171_v41 }
0x1207   :  { %3343 = vmatpush3.bf16.msra.mxu1 %v1779_v43  ;;  %3344 = vmatprep.mubr.msk.bf16.mxu1 %vm3672_vm1, %v3671_v18 }
0x1208   :  { %3354 = vmatprep.subr.bf16.mxu1 %v3671_v18 }
0x12d1   :  { %v1650_v44 = vpop.f32.mrb[48].mxu1 }
0x12d2   :  { %v3328_v47 = vpop.f32.mrb[49].mxu1  ;;  %v1705_v48 = vsel %vm300_vm4, %v1650_v44, -inf }
0x12d3   :  { %1706 = vmax.xlane.f32.xlu1 %v1705_v48  ;;  %v1653_v49 = vpop.f32.mrb[50].mxu1 }
0x12d4   :  { %v3329_v50 = vpop.f32.mrb[51].mxu1 }
0x12d9   :  { %v1699_v51 = vpop.f32.mrb[52].mxu1 }
0x12da   :  { %v3334_v34 = vpop.f32.mrb[53].mxu1  ;;  %v1708_v14 = vsel %vm300_vm4, %v1699_v51, -inf }
0x12db   :  { %1709 = vmax.xlane.f32.xlu0 %v1708_v14  ;;  %v1702_v24 = vpop.f32.mrb[54].mxu1 }
0x12dc   :  { %v3335_v27 = vpop.f32.mrb[55].mxu1 }
0x1360   :  { %v1707_v52 = vpop.xlane.xlu1 %1706 }
0x1361   :  { %v1711_v53 = vsub.f32 %v1650_v44, %v1707_v52 }
0x1363   :  { %v1713_v15 = vmul.f32 1.442695, %v1711_v53 }
0x1365   :  { %3603 = vpow2.f32 %v1713_v15 }
0x1368   :  { %v1710_v54 = vpop.xlane.xlu0 %1709 }
0x1369   :  { %v1712_v16 = vsub.f32 %v1699_v51, %v1710_v54 }
0x136b   :  { %v1715_v31 = vmul.f32 1.442695, %v1712_v16 }
0x136d   :  { %3605 = vpow2.f32 %v1715_v31 }
0x136f   :  { %v3604_v37 = vpop.eup %3603 }
0x1370   :  { %v1717_v55 = vsel %vm300_vm4, %v3604_v37, 0.0 }
0x1371   :  { %1718 = vadd.xlane.f32.xlu0 %v1717_v55 }
0x1377   :  { %v3606_v46 = vpop.eup %3605 }
0x1378   :  { %v1720_v56 = vsel %vm300_vm4, %v3606_v46, 0.0 }
0x1379   :  { %1721 = vadd.xlane.f32.xlu1 %v1720_v56 }
0x1387   :  { %1824 = vrot.lane.b32.xlu0 %v4146_v26, %s3673_s24 }
0x138a   :  { %1875 = vrot.lane.b32.xlu1 %v4150_v35, %s3673_s24 }
0x138b   :  { %1873 = vrot.lane.b32.xlu0 %v4171_v41, %s3674_s29 }
0x138e   :  { %1822 = vrot.lane.b32.xlu1 %v4161_v36, %s3674_s29 }
0x13fe   :  { %v1719_v45 = vpop.xlane.xlu0 %1718 }
0x13ff   :  { %3607 = vrcp.f32 %v1719_v45 }
0x1402   :  { %v1825_v60 = vpop.permute.xlu0 %1824 }
0x1403   :  { %v1830_v62 = vsel %vm204_vm3, %v1825_v60, 0 }
0x1406   :  { %v1722_v57 = vpop.xlane.xlu1 %1721  ;;  %v1874_v5 = vpop.permute.xlu0 %1873 }
0x1407   :  { %3609 = vrcp.f32 %v1722_v57 }
0x1409   :  { %v3608_v58 = vpop.eup %3607 }
0x140a   :  { %v1725_v59 = vmul.f32 %v3608_v58, %v3604_v37  ;;  %v1876_v63 = vpop.permute.xlu1 %1875 }
0x140b   :  { %v1881_v4 = vsel %vm204_vm3, %v1876_v63, 0 }
0x140c   :  { %v1727_v61 = vpack.c.bf16 %v1725_v59, %v1725_v59 }
0x140e   :  { %3339 = vmatmul.mubr.msk.bf16.vlgmr.msra.gmra.mrb[36].mxu0 %vm300_vm4, %v1727_v61  ;;  %v1823_v3 = vpop.permute.xlu1 %1822 }
0x140f   :  { %3349 = vmatpush3.bf16.xpose.msra.mxu0 %v1830_v62  ;;  %3350 = vmatprep.mubr.msk.bf16.mxu0 %vm3672_vm1, %v3671_v18 }
0x1410   :  { %3360 = vmatprep.subr.bf16.mxu0 %v3671_v18 }
0x1411   :  { %v3610_v0 = vpop.eup %3609 }
0x1412   :  { %v1726_v42 = vmul.f32 %v3610_v0, %v3606_v46 }
0x1414   :  { %v1728_v2 = vpack.c.bf16 %v1726_v42, %v1726_v42 }
0x1416   :  { %3345 = vmatmul.mubr.msk.bf16.vlgmr.msra.gmra.mrb[56].mxu1 %vm300_vm4, %v1728_v2  ;;  %3351 = vmatmul.mubr.msk.bf16.vlgmr.msra.gmra.mrb[40].mxu0 %vm204_vm3, %v1823_v3 }
0x1417   :  { %3355 = vmatpush3.bf16.xpose.msra.mxu1 %v1881_v4  ;;  %3356 = vmatprep.mubr.msk.bf16.mxu1 %vm3672_vm1, %v3671_v18 }
0x1418   :  { %3366 = vmatprep.subr.bf16.mxu1 %v3671_v18  ;;  %3362 = vmatprep.mubr.msk.bf16.mxu0 %vm3672_vm1, %v3671_v18 }
0x141e   :  { %3357 = vmatmul.mubr.msk.bf16.vlgmr.msra.gmra.mrb[60].mxu1 %vm204_vm3, %v1874_v5 }
0x141f   :  { %3368 = vmatprep.mubr.msk.bf16.mxu1 %vm3672_vm1, %v3671_v18 }
0x14e1   :  { %v4208_v6 = vpop.f32.mrb[36].mxu0 }
0x14e2   :  { %v3340_v9 = vpop.f32.mrb[37].mxu0 }
0x14e3   :  { %v1772_v10 = vpop.f32.mrb[38].mxu0 }
0x14e4   :  { %v3341_v11 = vpop.f32.mrb[39].mxu0 }
0x14e9   :  { %v4210_v12 = vpop.f32.mrb[56].mxu1  ;;  %v1866_v13 = vpop.f32.mrb[40].mxu0 }
0x14ea   :  { %v3346_v17 = vpop.f32.mrb[57].mxu1  ;;  %v3352_v19 = vpop.f32.mrb[41].mxu0  ;;  %v1923_v1 = vsel %vm300_vm4, %v1866_v13, -inf }
0x14eb   :  { %1924 = vmax.xlane.f32.xlu1 %v1923_v1  ;;  %v1818_v22 = vpop.f32.mrb[58].mxu1  ;;  %v1869_v28 = vpop.f32.mrb[42].mxu0 }
0x14ec   :  { %v3347_v30 = vpop.f32.mrb[59].mxu1  ;;  %v3353_v33 = vpop.f32.mrb[43].mxu0 }
0x14f1   :  { %v1917_v20 = vpop.f32.mrb[60].mxu1 }
0x14f2   :  { %v3358_v21 = vpop.f32.mrb[61].mxu1  ;;  %v1926_v23 = vsel %vm300_vm4, %v1917_v20, -inf }
0x14f3   :  { %1927 = vmax.xlane.f32.xlu0 %v1926_v23  ;;  %v1920_v25 = vpop.f32.mrb[62].mxu1 }
0x14f4   :  { %v3359_v29 = vpop.f32.mrb[63].mxu1 }
0x14fc   :  { %1997 = vrot.lane.b32.xlu1 %v4169_v40, %s3674_s29 }
0x1509   :  { %1948 = vrot.lane.b32.xlu0 %v4148_v32, %s3674_s29 }
0x1578   :  { %v1925_v38 = vpop.xlane.xlu1 %1924 }
0x1579   :  { %v1929_v39 = vsub.f32 %v1866_v13, %v1925_v38 }
0x157b   :  { %v1931_v43 = vmul.f32 1.442695, %v1929_v39 }
0x157c   :  { %v1998_v44 = vpop.permute.xlu1 %1997 }
0x157d   :  { %3611 = vpow2.f32 %v1931_v43  ;;  %v2003_v47 = vsel %vm328_vm2, %v1998_v44, 0 }
0x157e   :  { %3367 = vmatpush3.bf16.msra.mxu1 %v2003_v47 }
0x157f   :  { %3378 = vmatprep.subr.bf16.mxu1 %v3671_v18 }
0x1580   :  { %v1928_v48 = vpop.xlane.xlu0 %1927 }
0x1581   :  { %v1930_v49 = vsub.f32 %v1917_v20, %v1928_v48 }
0x1583   :  { %v1933_v50 = vmul.f32 1.442695, %v1930_v49 }
0x1584   :  { %v1949_v51 = vpop.permute.xlu0 %1948 }
0x1585   :  { %3613 = vpow2.f32 %v1933_v50  ;;  %v1954_v34 = vsel %vm328_vm2, %v1949_v51, 0 }
0x1586   :  { %3361 = vmatpush3.bf16.msra.mxu0 %v1954_v34 }
0x1587   :  { %v3612_v14 = vpop.eup %3611  ;;  %3372 = vmatprep.subr.bf16.mxu0 %v3671_v18 }
0x1588   :  { %v1935_v24 = vsel %vm300_vm4, %v3612_v14, 0.0 }
0x1589   :  { %1936 = vadd.xlane.f32.xlu0 %v1935_v24 }
0x158f   :  { %v3614_v27 = vpop.eup %3613 }
0x1590   :  { %v1938_v52 = vsel %vm300_vm4, %v3614_v27, 0.0 }
0x1591   :  { %1939 = vadd.xlane.f32.xlu1 %v1938_v52 }
0x159f   :  { %2097 = vrot.lane.b32.xlu0 %v4150_v35, %s3675_s30 }
0x15a2   :  { %2047 = vrot.lane.b32.xlu1 %v4146_v26, %s3675_s30 }
0x15a3   :  { %2095 = vrot.lane.b32.xlu0 %v4171_v41, %s3676_s0 }
0x15a6   :  { %2045 = vrot.lane.b32.xlu1 %v4161_v36, %s3676_s0 }
0x1616   :  { %v1937_v53 = vpop.xlane.xlu0 %1936 }
0x1617   :  { %3615 = vrcp.f32 %v1937_v53 }
0x161a   :  { %v2098_v45 = vpop.permute.xlu0 %2097 }
0x161b   :  { %v2103_v59 = vsel %vm204_vm3, %v2098_v45, 0 }
0x161e   :  { %v1940_v15 = vpop.xlane.xlu1 %1939  ;;  %v2096_v60 = vpop.permute.xlu0 %2095 }
0x161f   :  { %3617 = vrcp.f32 %v1940_v15 }
0x1621   :  { %v3616_v54 = vpop.eup %3615 }
0x1622   :  { %v1943_v16 = vmul.f32 %v3616_v54, %v3612_v14  ;;  %v2048_v31 = vpop.permute.xlu1 %2047 }
0x1623   :  { %v2053_v55 = vsel %vm204_vm3, %v2048_v31, 0 }
0x1624   :  { %v1945_v37 = vpack.c.bf16 %v1943_v16, %v1943_v16 }
0x1626   :  { %3363 = vmatmul.mubr.msk.bf16.vlgmr.msra.gmra.mrb[44].mxu0 %vm300_vm4, %v1945_v37  ;;  %v2046_v58 = vpop.permute.xlu1 %2045 }
0x1627   :  { %3373 = vmatpush3.bf16.xpose.msra.mxu0 %v2053_v55  ;;  %3374 = vmatprep.mubr.msk.bf16.mxu0 %vm3672_vm1, %v3671_v18 }
0x1628   :  { %3384 = vmatprep.subr.bf16.mxu0 %v3671_v18 }
0x1629   :  { %v3618_v46 = vpop.eup %3617 }
0x162a   :  { %v1944_v56 = vmul.f32 %v3618_v46, %v3614_v27 }
0x162c   :  { %v1946_v57 = vpack.c.bf16 %v1944_v56, %v1944_v56 }
0x162e   :  { %3369 = vmatmul.mubr.msk.bf16.vlgmr.msra.gmra.mrb[64].mxu1 %vm300_vm4, %v1946_v57  ;;  %3375 = vmatmul.mubr.msk.bf16.vlgmr.msra.gmra.mrb[48].mxu0 %vm204_vm3, %v2046_v58 }
0x162f   :  { %3379 = vmatpush3.bf16.xpose.msra.mxu1 %v2103_v59  ;;  %3380 = vmatprep.mubr.msk.bf16.mxu1 %vm3672_vm1, %v3671_v18 }
0x1630   :  { %3390 = vmatprep.subr.bf16.mxu1 %v3671_v18  ;;  %3386 = vmatprep.mubr.msk.bf16.mxu0 %vm3672_vm1, %v3671_v18 }
0x1636   :  { %3381 = vmatmul.mubr.msk.bf16.vlgmr.msra.gmra.mrb[68].mxu1 %vm204_vm3, %v2096_v60 }
0x1637   :  { %3392 = vmatprep.mubr.msk.bf16.mxu1 %vm3672_vm1, %v3671_v18 }
0x16f9   :  { %v4248_v61 = vpop.f32.mrb[44].mxu0 }
0x16fa   :  { %v3364_v62 = vpop.f32.mrb[45].mxu0 }
0x16fb   :  { %v1993_v63 = vpop.f32.mrb[46].mxu0 }
0x16fc   :  { %v3365_v0 = vpop.f32.mrb[47].mxu0 }
0x1701   :  { %v4250_v42 = vpop.f32.mrb[64].mxu1  ;;  %v2089_v2 = vpop.f32.mrb[48].mxu0 }
0x1702   :  { %v3492_v3 = vpack.i.bf16 %v4250_v42, %v4248_v61  ;;  %v3370_v4 = vpop.f32.mrb[65].mxu1  ;;  %v3376_v5 = vpop.f32.mrb[49].mxu0  ;;  %v2145_v9 = vsel %vm300_vm4, %v2089_v2, -inf }
0x1703   :  { %2146 = vmax.xlane.f32.xlu1 %v2145_v9  ;;  %v2042_v10 = vpop.f32.mrb[66].mxu1  ;;  %v2092_v11 = vpop.f32.mrb[50].mxu0 }
0x1704   :  { %v3371_v13 = vpop.f32.mrb[67].mxu1  ;;  %v3377_v17 = vpop.f32.mrb[51].mxu0 }
0x1709   :  { %v2139_v19 = vpop.f32.mrb[68].mxu1 }
0x170a   :  { %v3382_v1 = vpop.f32.mrb[69].mxu1  ;;  %v2148_v22 = vsel %vm300_vm4, %v2139_v19, -inf }
0x170b   :  { %2149 = vmax.xlane.f32.xlu0 %v2148_v22  ;;  %v2142_v28 = vpop.f32.mrb[70].mxu1 }
0x170c   :  { %v3383_v30 = vpop.f32.mrb[71].mxu1 }
0x1714   :  { %2217 = vrot.lane.b32.xlu1 %v4169_v40, %s3676_s0 }
0x1721   :  { %2169 = vrot.lane.b32.xlu0 %v4148_v32, %s3676_s0 }
0x1790   :  { %v2147_v33 = vpop.xlane.xlu1 %2146 }
0x1791   :  { %v2151_v20 = vsub.f32 %v2089_v2, %v2147_v33 }
0x1793   :  { %v2153_v21 = vmul.f32 1.442695, %v2151_v20 }
0x1794   :  { %v2218_v23 = vpop.permute.xlu1 %2217 }
0x1795   :  { %3619 = vpow2.f32 %v2153_v21  ;;  %v2223_v25 = vsel %vm328_vm2, %v2218_v23, 0 }
0x1796   :  { %3391 = vmatpush3.bf16.msra.mxu1 %v2223_v25 }
0x1797   :  { %3402 = vmatprep.subr.bf16.mxu1 %v3671_v18 }
0x1798   :  { %v2150_v29 = vpop.xlane.xlu0 %2149 }
0x1799   :  { %v2152_v38 = vsub.f32 %v2139_v19, %v2150_v29 }
0x179b   :  { %v2155_v39 = vmul.f32 1.442695, %v2152_v38 }
0x179c   :  { %v2170_v43 = vpop.permute.xlu0 %2169 }
0x179d   :  { %3621 = vpow2.f32 %v2155_v39  ;;  %v2175_v44 = vsel %vm328_vm2, %v2170_v43, 0 }
0x179e   :  { %3385 = vmatpush3.bf16.msra.mxu0 %v2175_v44 }
0x179f   :  { %v3620_v47 = vpop.eup %3619  ;;  %3396 = vmatprep.subr.bf16.mxu0 %v3671_v18 }
0x17a0   :  { %v2157_v48 = vsel %vm300_vm4, %v3620_v47, 0.0 }
0x17a1   :  { %2158 = vadd.xlane.f32.xlu0 %v2157_v48  ;;  %v3548_v48 = vld [vmem:[%s4420_s4 + $0x28] sm:$0xff]  }
0x17a7   :  { %v3622_v49 = vpop.eup %3621 }
0x17a8   :  { %v2160_v50 = vsel %vm300_vm4, %v3622_v49, 0.0 }
0x17a9   :  { %2161 = vadd.xlane.f32.xlu1 %v2160_v50  ;;  %v3550_v50 = vld [vmem:[%s4420_s4 + $0x38] sm:$0xff]  }
0x17b7   :  { %2317 = vrot.lane.b32.xlu0 %v4150_v35, %s3677_s15 }
0x17ba   :  { %2267 = vrot.lane.b32.xlu1 %v4146_v26, %s3677_s15 }
0x17bb   :  { %2315 = vrot.lane.b32.xlu0 %v4171_v41, %s3678_s18 }
0x17be   :  { %2265 = vrot.lane.b32.xlu1 %v4161_v36, %s3678_s18 }
0x182e   :  { %v2159_v51 = vpop.xlane.xlu0 %2158 }
0x182f   :  { %3623 = vrcp.f32 %v2159_v51 }
0x1832   :  { %v2318_v36 = vpop.permute.xlu0 %2317 }
0x1833   :  { %v2323_v54 = vsel %vm204_vm3, %v2318_v36, 0 }
0x1836   :  { %v2162_v34 = vpop.xlane.xlu1 %2161  ;;  %v2316_v16 = vpop.permute.xlu0 %2315 }
0x1837   :  { %3625 = vrcp.f32 %v2162_v34 }
0x1839   :  { %v3624_v14 = vpop.eup %3623 }
0x183a   :  { %v2165_v24 = vmul.f32 %v3624_v14, %v3620_v47  ;;  %v2268_v27 = vpop.permute.xlu1 %2267  ;;  %v3547_v47 = vld [vmem:[%s4420_s4 + $0x20] sm:$0xff]  }
0x183b   :  { %v2273_v53 = vsel %vm204_vm3, %v2268_v27, 0 }
0x183c   :  { %v2167_v52 = vpack.c.bf16 %v2165_v24, %v2165_v24 }
0x183e   :  { %3387 = vmatmul.mubr.msk.bf16.vlgmr.msra.gmra.mrb[52].mxu0 %vm300_vm4, %v2167_v52  ;;  %v2266_v15 = vpop.permute.xlu1 %2265 }
0x183f   :  { %3397 = vmatpush3.bf16.xpose.msra.mxu0 %v2273_v53  ;;  %3398 = vmatprep.mubr.msk.bf16.mxu0 %vm3672_vm1, %v3671_v18 }
0x1840   :  { %3408 = vmatprep.subr.bf16.mxu0 %v3671_v18 }
0x1841   :  { %v3626_v26 = vpop.eup %3625 }
0x1842   :  { %v2166_v35 = vmul.f32 %v3626_v26, %v3622_v49  ;;  %v3549_v49 = vld [vmem:[%s4420_s4 + $0x30] sm:$0xff]  }
0x1844   :  { %v2168_v41 = vpack.c.bf16 %v2166_v35, %v2166_v35 }
0x1846   :  { %3393 = vmatmul.mubr.msk.bf16.vlgmr.msra.gmra.mrb[72].mxu1 %vm300_vm4, %v2168_v41  ;;  %3399 = vmatmul.mubr.msk.bf16.vlgmr.msra.gmra.mrb[56].mxu0 %vm204_vm3, %v2266_v15 }
0x1847   :  { %3403 = vmatpush3.bf16.xpose.msra.mxu1 %v2323_v54  ;;  %3404 = vmatprep.mubr.msk.bf16.mxu1 %vm3672_vm1, %v3671_v18 }
0x1848   :  { %3414 = vmatprep.subr.bf16.mxu1 %v3671_v18  ;;  %3410 = vmatprep.mubr.msk.bf16.mxu0 %vm3672_vm1, %v3671_v18 }
0x184e   :  { %3405 = vmatmul.mubr.msk.bf16.vlgmr.msra.gmra.mrb[76].mxu1 %vm204_vm3, %v2316_v16 }
0x184f   :  { %3416 = vmatprep.mubr.msk.bf16.mxu1 %vm3672_vm1, %v3671_v18 }
0x1911   :  { %v2211_v31 = vpop.f32.mrb[52].mxu0 }
0x1912   :  { %v3388_v37 = vpop.f32.mrb[53].mxu0 }
0x1913   :  { %v2214_v55 = vpop.f32.mrb[54].mxu0 }
0x1914   :  { %v3389_v46 = vpop.f32.mrb[55].mxu0 }
0x1919   :  { %v2259_v56 = vpop.f32.mrb[72].mxu1  ;;  %v2309_v45 = vpop.f32.mrb[56].mxu0 }
0x191a   :  { %v3497_v57 = vpack.i.bf16 %v2259_v56, %v2211_v31  ;;  %v3394_v58 = vpop.f32.mrb[73].mxu1  ;;  %v3400_v59 = vpop.f32.mrb[57].mxu0  ;;  %v2365_v60 = vsel %vm300_vm4, %v2309_v45, -inf }
0x191b   :  { %2366 = vmax.xlane.f32.xlu1 %v2365_v60  ;;  %v2262_v62 = vpop.f32.mrb[74].mxu1  ;;  %v2312_v63 = vpop.f32.mrb[58].mxu0 }
0x191c   :  { %v3395_v0 = vpop.f32.mrb[75].mxu1  ;;  %v3401_v2 = vpop.f32.mrb[59].mxu0 }
0x1921   :  { %v2359_v4 = vpop.f32.mrb[76].mxu1 }
0x1922   :  { %v3406_v5 = vpop.f32.mrb[77].mxu1  ;;  %v2368_v9 = vsel %vm300_vm4, %v2359_v4, -inf }
0x1923   :  { %2369 = vmax.xlane.f32.xlu0 %v2368_v9  ;;  %v2362_v10 = vpop.f32.mrb[78].mxu1 }
0x1924   :  { %v3407_v11 = vpop.f32.mrb[79].mxu1 }
0x19a8   :  { %v2367_v13 = vpop.xlane.xlu1 %2366 }
0x19a9   :  { %v2371_v17 = vsub.f32 %v2309_v45, %v2367_v13 }
0x19ab   :  { %v2373_v19 = vmul.f32 1.442695, %v2371_v17 }
0x19ad   :  { %3627 = vpow2.f32 %v2373_v19 }
0x19b0   :  { %v2370_v1 = vpop.xlane.xlu0 %2369 }
0x19b1   :  { %v2372_v22 = vsub.f32 %v2359_v4, %v2370_v1 }
0x19b3   :  { %v2375_v28 = vmul.f32 1.442695, %v2372_v22 }
0x19b5   :  { %3629 = vpow2.f32 %v2375_v28 }
0x19b7   :  { %v3628_v30 = vpop.eup %3627 }
0x19b8   :  { %v2377_v33 = vsel %vm300_vm4, %v3628_v30, 0.0 }
0x19b9   :  { %2378 = vadd.xlane.f32.xlu0 %v2377_v33 }
0x19bf   :  { %v3630_v20 = vpop.eup %3629 }
0x19c0   :  { %v2380_v21 = vsel %vm300_vm4, %v3630_v20, 0.0 }
0x19c1   :  { %2381 = vadd.xlane.f32.xlu1 %v2380_v21 }
0x19cf   :  { %2389 = vrot.lane.b32.xlu0 %v4148_v32, %s3678_s18 }
0x19d2   :  { %2437 = vrot.lane.b32.xlu1 %v4169_v40, %s3678_s18 }
0x19d3   :  { %3498 = vrot.lane.b32.xlu0 %v3497_v57, %s3675_s30 }
0x19d6   :  { %3493 = vrot.lane.b32.xlu1 %v3492_v3, %s3677_s15 }
0x1a46   :  { %v2379_v23 = vpop.xlane.xlu0 %2378 }
0x1a47   :  { %3631 = vrcp.f32 %v2379_v23  ;;  %v3551_v23 = vld [vmem:[#allocation3 + $0x20] sm:$0xff]  }
0x1a4a   :  { %v2390_v25 = vpop.permute.xlu0 %2389 }
0x1a4b   :  { %v2395_v29 = vsel %vm328_vm2, %v2390_v25, 0  ;;  %v3553_v25 = vld [vmem:[#allocation3 + $0x30] sm:$0xff]  }
0x1a4c   :  { %3409 = vmatpush3.bf16.msra.mxu0 %v2395_v29  ;;  %v3554_v29 = vld [vmem:[#allocation3 + $0x38] sm:$0xff]  }
0x1a4d   :  { %3420 = vmatprep.subr.bf16.mxu0 %v3671_v18 }
0x1a4e   :  { %v2382_v38 = vpop.xlane.xlu1 %2381  ;;  %v3499_v54 = vpop.permute.xlu0 %3498 }
0x1a4f   :  { %3633 = vrcp.f32 %v2382_v38  ;;  %v3501_v37 = vunpack.i.h.bf16 %v3499_v54  ;;  %v3500_v55 = vunpack.i.l.bf16 %v3499_v54  ;;  %v3555_v38 = vld [vmem:[%s4426_s10 + $0x40] sm:$0xff]  }
0x1a50   :  { %v3044_v54 = vld [vmem:[%s4425_s9 + $0x1] ss:$0 sm:$0xff] }
0x1a51   :  { %v3632_v32 = vpop.eup %3631 }
0x1a52   :  { %v2385_v39 = vmul.f32 %v3632_v32, %v3628_v30  ;;  %v2438_v40 = vpop.permute.xlu1 %2437  ;;  %v3556_v32 = vld [vmem:[%s4426_s10 + $0x48] sm:$0xff]  }
0x1a53   :  { %v2443_v43 = vsel %vm328_vm2, %v2438_v40, 0  ;;  %v3558_v40 = vld [vmem:[%s4426_s10 + $0x58] sm:$0xff]  }
0x1a54   :  { %3415 = vmatpush3.bf16.msra.mxu1 %v2443_v43  ;;  %v2387_v44 = vpack.c.bf16 %v2385_v39, %v2385_v39  ;;  %v3557_v39 = vld [vmem:[%s4426_s10 + $0x50] sm:$0xff]   ;;  %v3559_v43 = vld [vmem:[%s4426_s10 + $0x60] sm:$0xff]  }
0x1a55   :  { %3432 = vmatprep.subr.bf16.mxu1 %v3671_v18 }
0x1a56   :  { %3411 = vmatmul.mubr.msk.bf16.vlgmr.msra.gmra.mrb[60].mxu0 %vm300_vm4, %v2387_v44  ;;  %v3494_v36 = vpop.permute.xlu1 %3493  ;;  %v3560_v44 = vld [vmem:[%s4426_s10 + $0x68] sm:$0xff]  }
0x1a57   :  { %3428 = vmatprep.mubr.msk.bf16.mxu0 %vm3672_vm1, %v3671_v18  ;;  %3421 = vmatpush3.bf16.msra.mxu0 %v3547_v47  ;;  %v3496_v41 = vunpack.i.h.bf16 %v3494_v36  ;;  %v3495_v15 = vunpack.i.l.bf16 %v3494_v36 }
0x1a58   :  { %3422 = vmatprep.subr.bf16.mxu0 %v3671_v18 }
0x1a59   :  { %v3634_v61 = vpop.eup %3633  ;;  %v2510_v16 = vsel %vm204_vm3, %v4210_v12, %v3496_v41  ;;  %v2509_v31 = vsel %vm204_vm3, %v4208_v6, %v3495_v15  ;;  %v3033_v6 = vld [vmem:[%s4421_s5 + $0x1] ss:$0 sm:$0xff]  ;;  %v3561_v41 = vld [vmem:[%s4426_s10 + $0x70] sm:$0xff]   ;;  %v3562_v15 = vld [vmem:[%s4426_s10 + $0x78] sm:$0xff]  }
0x1a5a   :  { %v2386_v42 = vmul.f32 %v3634_v61, %v3630_v20  ;;  %v2511_v57 = vsel %vm1108_vm5, %v2509_v31, %v3500_v55  ;;  %v2512_v58 = vsel %vm1108_vm5, %v2510_v16, %v3501_v37 }
0x1a5b   :  { %3423 = vmatpush3.bf16.msra.mxu0 %v3548_v48 }
0x1a5c   :  { %v2388_v3 = vpack.c.bf16 %v2386_v42, %v2386_v42  ;;  %3424 = vmatprep.subr.bf16.mxu0 %v3671_v18 }
0x1a5e   :  { %3417 = vmatmul.mubr.msk.bf16.vlgmr.msra.gmra.mrb[80].mxu1 %vm300_vm4, %v2388_v3 }
0x1a5f   :  { %3440 = vmatprep.mubr.msk.bf16.mxu1 %vm3672_vm1, %v3671_v18  ;;  %3425 = vmatpush3.bf16.msra.mxu0 %v3549_v49 }
0x1a60   :  { %3426 = vmatprep.subr.bf16.mxu0 %v3671_v18  ;;  %3433 = vmatpush3.bf16.msra.mxu1 %v3551_v23 }
0x1a61   :  { %3434 = vmatprep.subr.bf16.mxu1 %v3671_v18 }
0x1a63   :  { %3427 = vmatpush3.bf16.msra.mxu0 %v3550_v50 }
0x1a64   :  { %3444 = vmatprep.subr.bf16.mxu0 %v3671_v18 }
0x1b29   :  { %v2431_v51 = vpop.f32.mrb[60].mxu0 }
0x1b2a   :  { %v3412_v34 = vpop.f32.mrb[61].mxu0 }
0x1b2b   :  { %v2434_v14 = vpop.f32.mrb[62].mxu0  ;;  %v3041_v34 = vld [vmem:[%s4422_s6 + $0x1] ss:$0 sm:$0xff] }
0x1b2c   :  { %v3413_v24 = vpop.f32.mrb[63].mxu0 }
0x1b31   :  { %v2479_v27 = vpop.f32.mrb[80].mxu1 }
0x1b32   :  { %v3502_v52 = vpack.i.bf16 %v2479_v27, %v2431_v51  ;;  %v3418_v53 = vpop.f32.mrb[81].mxu1 }
0x1b33   :  { %v2482_v26 = vpop.f32.mrb[82].mxu1 }
0x1b34   :  { %3503 = vrot.lane.b32.xlu1 %v3502_v52, %s3673_s24  ;;  %v3419_v35 = vpop.f32.mrb[83].mxu1  ;;  %v3042_v52 = vld [vmem:[%s4423_s7 + $0x1] ss:$0 sm:$0xff] }
0x1ba6   :  { %v3504_v46 = vpop.permute.xlu1 %3503 }
0x1ba7   :  { %v3506_v56 = vunpack.i.h.bf16 %v3504_v46  ;;  %v3505_v45 = vunpack.i.l.bf16 %v3504_v46 }
0x1ba9   :  { %v2514_v59 = vsel %vm1111_vm6, %v2512_v58, %v3506_v56  ;;  %v2513_v60 = vsel %vm1111_vm6, %v2511_v57, %v3505_v45 }
0x1baa   :  { %v2515_v62 = vpack.c.bf16 %v2514_v59, %v2513_v60 }
0x1bac   :  { %3429 = vmatmul.mubr.msk.bf16.vlgmr.msra.gmra.mrb[64].mxu0 %vm146_vm0, %v2515_v62 }
0x1bad   :  { %3460 = vmatprep.mubr.msk.bf16.mxu0 %vm3672_vm1, %v3671_v18  ;;  %3445 = vmatpush3.bf16.msra.mxu0 %v3555_v38 }
0x1bae   :  { %3446 = vmatprep.subr.bf16.mxu0 %v3671_v18 }
0x1bb1   :  { %3447 = vmatpush3.bf16.msra.mxu0 %v3556_v32 }
0x1bb2   :  { %3448 = vmatprep.subr.bf16.mxu0 %v3671_v18 }
0x1bb5   :  { %3449 = vmatpush3.bf16.msra.mxu0 %v3557_v39  ;;  %v3079_v39 = vld [vmem:[%s4429_s13 + $0x1] ss:$0 sm:$0xff] }
0x1bb6   :  { %3450 = vmatprep.subr.bf16.mxu0 %v3671_v18 }
0x1bb9   :  { %3451 = vmatpush3.bf16.msra.mxu0 %v3558_v40 }
0x1bba   :  { %3452 = vmatprep.subr.bf16.mxu0 %v3671_v18 }
0x1bbd   :  { %3453 = vmatpush3.bf16.msra.mxu0 %v3559_v43 }
0x1bbe   :  { %3454 = vmatprep.subr.bf16.mxu0 %v3671_v18 }
0x1bc1   :  { %3455 = vmatpush3.bf16.msra.mxu0 %v3560_v44  ;;  %v3080_v44 = vld [vmem:[%s4430_s14] ss:$0 sm:$0xff] }
0x1bc2   :  { %3456 = vmatprep.subr.bf16.mxu0 %v3671_v18 }
0x1bc5   :  { %3457 = vmatpush3.bf16.msra.mxu0 %v3561_v41 }
0x1bc6   :  { %3458 = vmatprep.subr.bf16.mxu0 %v3671_v18 }
0x1bc9   :  { %3459 = vmatpush3.bf16.msra.mxu0 %v3562_v15 }
0x1c7f   :  { %v2594_v12 = vpop.f32.mrb[64].mxu0 }
0x1c80   :  { %v2595_v63 = vadd.f32 %v3033_v6, %v2594_v12  ;;  %v3430_v0 = vpop.f32.mrb[65].mxu0 }
0x1c81   :  { %v2597_v2 = vpop.f32.mrb[66].mxu0 }
0x1c82   :  { %v2598_v4 = vadd.f32 %v3033_v6, %v2597_v2  ;;  %v3431_v5 = vpop.f32.mrb[67].mxu0  ;;  %v2601_v9 = vadd.f32 %v2595_v63, %v4130_v7 }
0x1c84   :  { %v2607_v10 = vsel %vm146_vm0, %v2601_v9, 0.0  ;;  %v2602_v11 = vadd.f32 %v2598_v4, %v4132_v8  ;;  %v3552_v8 = vld [vmem:[#allocation3 + $0x28] sm:$0xff]  }
0x1c85   :  { %2608 = vadd.xlane.f32.xlu0 %v2607_v10  ;;  %3435 = vmatpush3.bf16.msra.mxu1 %v3552_v8 }
0x1c86   :  { %v2610_v13 = vsel %vm146_vm0, %v2602_v11, 0.0  ;;  %3436 = vmatprep.subr.bf16.mxu1 %v3671_v18 }
0x1c87   :  { %2611 = vadd.xlane.f32.xlu1 %v2610_v13 }
0x1c89   :  { %3437 = vmatpush3.bf16.msra.mxu1 %v3553_v25 }
0x1c8a   :  { %3438 = vmatprep.subr.bf16.mxu1 %v3671_v18  ;;  %v3067_v18 = vld [vmem:[%s4427_s11 + $0x1] ss:$0 sm:$0xff] }
0x1c8d   :  { %3439 = vmatpush3.bf16.msra.mxu1 %v3554_v29  ;;  %v3078_v29 = vld [vmem:[%s4428_s12 + $0x1] ss:$0 sm:$0xff] }
0x1d12   :  { %v2609_v17 = vpop.xlane.xlu0 %2608 }
0x1d13   :  { %v2613_v19 = vmul.f32 0.015625, %v2609_v17 }
0x1d14   :  { %v2612_v1 = vpop.xlane.xlu1 %2611 }
0x1d15   :  { %v2615_v22 = vsub.f32 %v2601_v9, %v2613_v19  ;;  %v2614_v28 = vmul.f32 0.015625, %v2612_v1 }
0x1d17   :  { %v2616_v30 = vsub.f32 %v2602_v11, %v2614_v28  ;;  %v2617_v33 = vmul.f32 %v2615_v22, %v2615_v22 }
0x1d19   :  { %v2619_v20 = vsel %vm146_vm0, %v2617_v33, 0.0  ;;  %v2618_v21 = vmul.f32 %v2616_v30, %v2616_v30 }
0x1d1a   :  { %2620 = vadd.xlane.f32.xlu0 %v2619_v20 }
0x1d1b   :  { %v2622_v7 = vsel %vm146_vm0, %v2618_v21, 0.0 }
0x1d1e   :  { %2623 = vadd.xlane.f32.xlu0 %v2622_v7 }
0x1da7   :  { %v2621_v61 = vpop.xlane.xlu0 %2620 }
0x1da8   :  { %v2625_v42 = vmul.f32 0.015625, %v2621_v61 }
0x1daa   :  { %v2627_v3 = vadd.f32 1e-05, %v2625_v42 }
0x1dab   :  { %v2624_v47 = vpop.xlane.xlu0 %2623 }
0x1dac   :  { %3635 = vrsqrt.f32 %v2627_v3  ;;  %v2626_v48 = vmul.f32 0.015625, %v2624_v47 }
0x1dae   :  { %v2628_v49 = vadd.f32 1e-05, %v2626_v48 }
0x1db0   :  { %3637 = vrsqrt.f32 %v2628_v49 }
0x1db6   :  { %v3636_v50 = vpop.eup %3635 }
0x1db7   :  { %v2631_v51 = vmul.f32 %v3636_v50, %v2615_v22 }
0x1db9   :  { %v2639_v24 = vmul.f32 %v3041_v34, %v2631_v51 }
0x1dba   :  { %v3638_v14 = vpop.eup %3637 }
0x1dbb   :  { %v2632_v27 = vmul.f32 %v3638_v14, %v2616_v30  ;;  %v2647_v26 = vadd.f32 %v3042_v52, %v2639_v24 }
0x1dbd   :  { %v2640_v53 = vmul.f32 %v3041_v34, %v2632_v27  ;;  %v3081_v34 = vld [vmem:[#allocation2] ss:$0 sm:$0xff] }
0x1dbf   :  { %v2648_v35 = vadd.f32 %v3042_v52, %v2640_v53 }
0x1dc1   :  { %v2649_v36 = vpack.c.bf16 %v2648_v35, %v2647_v26 }
0x1dc3   :  { %3441 = vmatmul.mubr.msk.bf16.vlgmr.msra.gmra.mrb[84].mxu1 %vm146_vm0, %v2649_v36 }
0x1e96   :  { %v2728_v16 = vpop.f32.mrb[84].mxu1 }
0x1e97   :  { %v2729_v31 = vadd.f32 %v3044_v54, %v2728_v16  ;;  %v3442_v37 = vpop.f32.mrb[85].mxu1 }
0x1e98   :  { %v2731_v55 = vpop.f32.mrb[86].mxu1 }
0x1e99   :  { %v2732_v46 = vadd.f32 %v3044_v54, %v2731_v55  ;;  %v3443_v56 = vpop.f32.mrb[87].mxu1  ;;  %v2735_v45 = vmax.f32 %v2729_v31, 0.0 }
0x1e9b   :  { %v2736_v57 = vmax.f32 %v2732_v46, 0.0 }
0x1e9d   :  { %v2737_v58 = vpack.c.bf16 %v2736_v57, %v2735_v45 }
0x1e9f   :  { %3461 = vmatmul.mubr.bf16.vlgmr.msra.gmra.mrb[68].mxu0 %v2737_v58 }
0x1f72   :  { %v2845_v59 = vpop.f32.mrb[68].mxu0 }
0x1f73   :  { %v2846_v60 = vadd.f32 %v3067_v18, %v2845_v59  ;;  %v3462_v62 = vpop.f32.mrb[69].mxu0 }
0x1f74   :  { %v2848_v6 = vpop.f32.mrb[70].mxu0 }
0x1f75   :  { %v2849_v12 = vadd.f32 %v3067_v18, %v2848_v6  ;;  %v3463_v63 = vpop.f32.mrb[71].mxu0  ;;  %v2852_v0 = vadd.f32 %v2846_v60, %v2647_v26 }
0x1f77   :  { %v2858_v2 = vsel %vm146_vm0, %v2852_v0, 0.0  ;;  %v2853_v4 = vadd.f32 %v2849_v12, %v2648_v35 }
0x1f78   :  { %2859 = vadd.xlane.f32.xlu0 %v2858_v2 }
0x1f79   :  { %v2861_v5 = vsel %vm146_vm0, %v2853_v4, 0.0 }
0x1f7a   :  { %2862 = vadd.xlane.f32.xlu1 %v2861_v5 }
0x2005   :  { %v2860_v9 = vpop.xlane.xlu0 %2859 }
0x2006   :  { %v2864_v10 = vmul.f32 0.015625, %v2860_v9 }
0x2007   :  { %v2863_v11 = vpop.xlane.xlu1 %2862 }
0x2008   :  { %v2866_v13 = vsub.f32 %v2852_v0, %v2864_v10  ;;  %v2865_v17 = vmul.f32 0.015625, %v2863_v11 }
0x200a   :  { %v2867_v19 = vsub.f32 %v2853_v4, %v2865_v17  ;;  %v2868_v1 = vmul.f32 %v2866_v13, %v2866_v13 }
0x200c   :  { %v2870_v22 = vsel %vm146_vm0, %v2868_v1, 0.0  ;;  %v2869_v28 = vmul.f32 %v2867_v19, %v2867_v19 }
0x200d   :  { %2871 = vadd.xlane.f32.xlu0 %v2870_v22 }
0x200e   :  { %v2873_v30 = vsel %vm146_vm0, %v2869_v28, 0.0 }
0x200f   :  { %2874 = vadd.xlane.f32.xlu1 %v2873_v30 }
0x209a   :  { %v2872_v33 = vpop.xlane.xlu0 %2871 }
0x209b   :  { %v2876_v20 = vmul.f32 0.015625, %v2872_v33 }
0x209c   :  { %v2875_v21 = vpop.xlane.xlu1 %2874 }
0x209d   :  { %v2878_v7 = vadd.f32 1e-05, %v2876_v20  ;;  %v2877_v23 = vmul.f32 0.015625, %v2875_v21 }
0x209f   :  { %3639 = vrsqrt.f32 %v2878_v7  ;;  %v2879_v8 = vadd.f32 1e-05, %v2877_v23 }
0x20a1   :  { %3641 = vrsqrt.f32 %v2879_v8 }
0x20a9   :  { %v3640_v25 = vpop.eup %3639 }
0x20aa   :  { %v2882_v38 = vmul.f32 %v3640_v25, %v2866_v13 }
0x20ab   :  { %v3642_v32 = vpop.eup %3641 }
0x20ac   :  { %v2890_v40 = vmul.f32 %v3078_v29, %v2882_v38  ;;  %v2883_v43 = vmul.f32 %v3642_v32, %v2867_v19 }
0x20ae   :  { %v2898_v61 = vadd.f32 %v3079_v39, %v2890_v40  ;;  %v2891_v42 = vmul.f32 %v3078_v29, %v2883_v43 }
0x20b0   :  { %v2907_v3 = vmul.f32 %v3080_v44, %v2898_v61  ;;  %v2899_v47 = vadd.f32 %v3079_v39, %v2891_v42 }
0x20b2   :  { %v2915_v48 = vsel %vm2914_vm7, %v2907_v3, 0.0  ;;  %v2908_v49 = vmul.f32 %v3080_v44, %v2899_v47 }
0x20b3   :  { %2916 = vadd.xlane.f32.xlu1 %v2915_v48 }
0x20b4   :  { %v2911_v50 = vrot.slane %v2908_v49, 7 }
0x20b6   :  { %v2919_v51 = vsel %vm2918_vm8, %v2911_v50, 0.0 }
0x20b7   :  { %2920 = vadd.xlane.f32.xlu0 %v2919_v51 }
0x2140   :  { %v2917_v14 = vpop.xlane.xlu1 %2916 }
0x2141   :  { %v2929_v24 = vadd.f32 %v3081_v34, %v2917_v14 }
0x2143   :  { %2932 = vst.msk [vmem:[%s4432_s16 - $0x7] sm:$0x80] %vm2931_vm9, %v2929_v24 }
0x2144   :  { %v2921_v27 = vpop.xlane.xlu0 %2920 }
0x2145   :  { %v2930_v52 = vadd.f32 %v3081_v34, %v2921_v27 }
0x2147   :  { %2934 = vst.msk [vmem:[%s4432_s16 + $0x1] sm:$0x1] %vm2933_vm10, %v2930_v52 }
0x2148   :  { %2939 = vsyncpa [#allocation4], 1 }

</bundles_post_ra>
